<compile_context>
chip_gen: v7x
topology: tpu7x:2x2x1
jax: 0.10.0
libtpu: 0.0.40
codegen_flags: <defaults>
</compile_context>

<pallas_src>
import numpy as np
import jax
import jax.numpy as jnp
from jax.experimental import pallas as pl
from jax.experimental.pallas import tpu as pltpu


def _interp_matrix_align_corners(n_in: int, n_out: int) -> np.ndarray:
    """(n_out, n_in) matrix reproducing F.interpolate(mode='bilinear', align_corners=True)."""
    A = np.zeros((n_out, n_in), dtype=np.float32)
    if n_out == 1 or n_in == 1:
        A[:, 0] = 1.0
        return A
    src = np.arange(n_out, dtype=np.float64) * (n_in - 1) / (n_out - 1)
    i0 = np.clip(np.floor(src).astype(np.int64), 0, n_in - 1)
    i1 = np.minimum(i0 + 1, n_in - 1)
    frac = (src - i0).astype(np.float32)
    rows = np.arange(n_out)
    np.add.at(A, (rows, i0), 1.0 - frac)
    np.add.at(A, (rows, i1), frac)
    return A


def _make_kernel(C_in, C_out, H, W, H2, W2, PH, WP, RC, compute_dtype):
    S_CHUNK = RC * WP          # lanes per row-chunk in the WP-strided layout

    def kernel(x_ref, ahT_ref, awT_ref, w_ref, b_ref, o_ref, stk_ref):
        cd = compute_dtype

        # ---------- bilinear upsample (+ folded zero border) via two f32 MXU matmuls ------
        x = x_ref[0].astype(jnp.float32)                              # (C_in, H, W)
        xt = jnp.swapaxes(x, 1, 2).reshape(C_in * W, H)
        u1 = jnp.dot(xt, ahT_ref[...], preferred_element_type=jnp.float32)   # (C_in*W, PH)
        u1 = jnp.swapaxes(u1.reshape(C_in, W, PH), 1, 2).reshape(C_in * PH, W)
        u2 = jnp.dot(u1, awT_ref[...], preferred_element_type=jnp.float32)   # (C_in*PH, WP)
        u2 = u2.reshape(C_in, PH, WP)          # u2[c, p, q] == zero-padded upsampled image

        # ---------- build ky-stacked conv RHS (3 bulk stores, no per-row loop) ------------
        # stk[ky*C_in + c, y*WP + q] = u2[c, y + ky, q]; rows H2..H2+2 of u2 are the zero
        # bottom border, so tap reads that spill past the last row touch only junk columns.
        for ky in range(3):
            stk_ref[ky * C_in:(ky + 1) * C_in, :] = (
                u2[:, ky:ky + H2 + 1, :].reshape(C_in, (H2 + 1) * WP).astype(cd))

        # ---------- 3x3 conv: per row-chunk, 3 MXU matmuls with K = 3*C_in ----------------
        b = b_ref[...].astype(jnp.float32)                            # (C_out, 1)
        for r0 in range(0, H2, RC):
            base = r0 * WP
            acc = jnp.dot(w_ref[0], stk_ref[:, base:base + S_CHUNK],
                          preferred_element_type=jnp.float32)
            for kx in (1, 2):
                acc = acc + jnp.dot(w_ref[kx],
                                    stk_ref[:, base + kx:base + kx + S_CHUNK],
                                    preferred_element_type=jnp.float32)
            # strip the 2 junk columns per row in-kernel and store the final layout
            y = acc.reshape(C_out, RC, WP)[:, :, :W2] + b[:, :, None]
            if RC == H2:
                o_ref[0] = y.astype(o_ref.dtype)
            else:
                o_ref[0, :, r0:r0 + RC, :] = y.astype(o_ref.dtype)

    return kernel


def upsample_conv(x, weight, bias, scale_factor=2, compute_dtype=jnp.bfloat16):
    N, C_in, H, W = x.shape
    C_out = weight.shape[0]
    H2, W2 = H * scale_factor, W * scale_factor
    assert H % 8 == 0 and W % 8 == 0, "H and W must be multiples of 8"

    PH = ((H2 + 3 + 7) // 8) * 8          # padded rows available to the taps (>= H2 + 3)
    WP = W2 + 2                           # padded row stride (1px zero border each side)

    # row-chunk size for the conv accumulator: largest divisor of H2 within budget
    acc_budget = 512 * 1024
    max_rows = max(1, acc_budget // max(1, C_out * WP * 4))
    RC = 1
    for d in range(1, H2 + 1):
        if H2 % d == 0 and d <= max_rows:
            RC = d

    # interpolation matrices (transposed), f32, with the conv's zero border folded in
    A_h = _interp_matrix_align_corners(H, H2)      # (H2, H)
    A_w = _interp_matrix_align_corners(W, W2)      # (W2, W)
    ahT = np.zeros((H, PH), np.float32)
    ahT[:, 1:H2 + 1] = A_h.T
    awT = np.zeros((W, WP), np.float32)
    awT[:, 1:W2 + 1] = A_w.T
    ahT = jnp.asarray(ahT)
    awT = jnp.asarray(awT)

    # per-kx weight slabs: (3, C_out, 3*C_in), last index = ky*C_in + c
    w_kx = jnp.transpose(weight, (3, 0, 2, 1)).reshape(3, C_out, 3 * C_in).astype(compute_dtype)
    b2 = bias.reshape(C_out, 1).astype(jnp.float32)

    kernel = _make_kernel(C_in, C_out, H, W, H2, W2, PH, WP, RC, compute_dtype)

    # explicit VMEM budget (double-buffered in/out blocks + stacked scratch + temporaries)
    cdb = jnp.dtype(compute_dtype).itemsize
    xb = jnp.dtype(x.dtype).itemsize
    footprint = (2 * C_in * H * W * xb
                 + 2 * C_out * H2 * W2 * xb
                 + 3 * C_in * (H2 + 1) * WP * cdb
                 + 3 * C_in * PH * WP * 4
                 + 2 * C_out * RC * WP * 4
                 + 2 * (H * PH + W * WP + 9 * C_out * C_in + C_out) * 4)
    # cap at 64 MiB so the request stays within every generation's physical VMEM
    vmem_limit = int(min(64 * 2 ** 20, max(32 * 2 ** 20, int(footprint * 1.5))))

    out = pl.pallas_call(
        kernel,
        out_shape=jax.ShapeDtypeStruct((N, C_out, H2, W2), x.dtype),
        grid=(N,),
        in_specs=[
            pl.BlockSpec((1, C_in, H, W), lambda n: (n, 0, 0, 0)),
            pl.BlockSpec((H, PH), lambda n: (0, 0)),
            pl.BlockSpec((W, WP), lambda n: (0, 0)),
            pl.BlockSpec((3, C_out, 3 * C_in), lambda n: (0, 0, 0)),
            pl.BlockSpec((C_out, 1), lambda n: (0, 0)),
        ],
        out_specs=pl.BlockSpec((1, C_out, H2, W2), lambda n: (n, 0, 0, 0)),
        scratch_shapes=[pltpu.VMEM((3 * C_in, (H2 + 1) * WP), compute_dtype)],
        compiler_params=pltpu.CompilerParams(
            dimension_semantics=("parallel",),
            vmem_limit_bytes=vmem_limit),
    )(x, ahT, awT, w_kx, b2)
    return out


def upsample_conv_reference(x, weight, bias, scale_factor=2):
    """Pure-JAX reference (same align_corners=True semantics as PyTorch)."""
    N, C_in, H, W = x.shape
    H2, W2 = H * scale_factor, W * scale_factor
    A_h = jnp.asarray(_interp_matrix_align_corners(H, H2))
    A_w = jnp.asarray(_interp_matrix_align_corners(W, W2))
    up = jnp.einsum('ph,nchw->ncpw', A_h, x)
    up = jnp.einsum('ncpw,qw->ncpq', up, A_w)
    out = jax.lax.conv_general_dilated(
        up, weight, window_strides=(1, 1), padding=((1, 1), (1, 1)),
        dimension_numbers=('NCHW', 'OIHW', 'NCHW'))
    return out + bias[None, :, None, None]


if __name__ == "__main__":
    key = jax.random.PRNGKey(0)
    k1, k2, k3 = jax.random.split(key, 3)
    N, C_in, C_out, H, W = 2, 4, 8, 16, 16

    x = jax.random.normal(k1, (N, C_in, H, W), jnp.float32)
    fan_in = C_in * 3 * 3
    bound = 1.0 / np.sqrt(fan_in)
    weight = jax.random.uniform(k2, (C_out, C_in, 3, 3), jnp.float32, -bound, bound)
    bias = jax.random.uniform(k3, (C_out,), jnp.float32, -bound, bound)

    ref = upsample_conv_reference(x, weight, bias, scale_factor=2)

    # f32 matmul operands: near-exact check
    out_f32 = jax.block_until_ready(upsample_conv(x, weight, bias, 2, jnp.float32))
    assert out_f32.shape == (N, C_out, 2 * H, 2 * W), out_f32.shape
    assert jnp.allclose(out_f32, ref, atol=2e-4, rtol=2e-4), float(
        jnp.max(jnp.abs(out_f32 - ref)))

    # bf16 conv operands, f32 accumulation, f32 interpolation (default MXU path, all gens)
    out_bf16 = jax.block_until_ready(upsample_conv(x, weight, bias, 2, jnp.bfloat16))
    assert out_bf16.shape == (N, C_out, 2 * H, 2 * W), out_bf16.shape
    assert jnp.allclose(out_bf16, ref, atol=4e-2, rtol=4e-2), float(
        jnp.max(jnp.abs(out_bf16 - ref)))

    print("KERNEL_OK")
</pallas_src>

<mosaic_0001>
module attributes {stable_mosaic.version = 11 : i64} {
  func.func @kernel(%arg0: i32, %arg1: memref<1x4x16x16xf32, #tpu.memory_space<vmem>>, %arg2: memref<16x40xf32, #tpu.memory_space<vmem>>, %arg3: memref<16x34xf32, #tpu.memory_space<vmem>>, %arg4: memref<3x8x12xf32, #tpu.memory_space<vmem>>, %arg5: memref<8x1xf32, #tpu.memory_space<vmem>>, %arg6: memref<1x8x32x32xf32, #tpu.memory_space<vmem>>, %arg7: memref<12x1122xf32, #tpu.memory_space<vmem>>) attributes {dimension_semantics = [#tpu.dimension_semantics<parallel>], iteration_bounds = array<i64: 2>, scalar_prefetch = 0 : i64, scratch_operands = 1 : i64, tpu.core_type = #tpu.core_type<tc>, window_params = [{transform_indices = @transform_0, window_bounds = array<i64: 1, 4, 16, 16>}, {pipeline_mode = #tpu.pipeline_mode<synchronous>, transform_indices = @transform_1, window_bounds = array<i64: 16, 40>}, {pipeline_mode = #tpu.pipeline_mode<synchronous>, transform_indices = @transform_2, window_bounds = array<i64: 16, 34>}, {pipeline_mode = #tpu.pipeline_mode<synchronous>, transform_indices = @transform_3, window_bounds = array<i64: 3, 8, 12>}, {pipeline_mode = #tpu.pipeline_mode<synchronous>, transform_indices = @transform_4, window_bounds = array<i64: 8, 1>}, {transform_indices = @transform_5, window_bounds = array<i64: 1, 8, 32, 32>}]} {
    %c0 = arith.constant 0 : index
    %c0_0 = arith.constant 0 : index
    %c0_1 = arith.constant 0 : index
    %c0_2 = arith.constant 0 : index
    %0 = vector.load %arg1[%c0, %c0_0, %c0_1, %c0_2] : memref<1x4x16x16xf32, #tpu.memory_space<vmem>>, vector<1x4x16x16xf32>
    %1 = vector.shape_cast %0 : vector<1x4x16x16xf32> to vector<4x16x16xf32>
    %2 = tpu.transpose %1, [0, 2, 1] : vector<4x16x16xf32> -> vector<4x16x16xf32>
    %3 = vector.shape_cast %2 : vector<4x16x16xf32> to vector<64x16xf32>
    %c0_3 = arith.constant 0 : index
    %c0_4 = arith.constant 0 : index
    %4 = vector.load %arg2[%c0_3, %c0_4] : memref<16x40xf32, #tpu.memory_space<vmem>>, vector<16x40xf32>
    %cst = arith.constant dense<0.000000e+00> : vector<64x40xf32>
    %5 = tpu.matmul %3, %4, %cst {dimension_numbers = #tpu.dot_dimension_numbers<[1], [0], [0], [1], [0, 0, 1, 1], [], []>} : vector<64x16xf32>, vector<16x40xf32>, vector<64x40xf32> -> vector<64x40xf32>
    %6 = vector.shape_cast %5 : vector<64x40xf32> to vector<4x16x40xf32>
    %7 = tpu.transpose %6, [0, 2, 1] : vector<4x16x40xf32> -> vector<4x40x16xf32>
    %8 = vector.shape_cast %7 : vector<4x40x16xf32> to vector<160x16xf32>
    %c0_5 = arith.constant 0 : index
    %c0_6 = arith.constant 0 : index
    %9 = vector.load %arg3[%c0_5, %c0_6] : memref<16x34xf32, #tpu.memory_space<vmem>>, vector<16x34xf32>
    %cst_7 = arith.constant dense<0.000000e+00> : vector<160x34xf32>
    %10 = tpu.matmul %8, %9, %cst_7 {dimension_numbers = #tpu.dot_dimension_numbers<[1], [0], [0], [1], [0, 0, 1, 1], [], []>} : vector<160x16xf32>, vector<16x34xf32>, vector<160x34xf32> -> vector<160x34xf32>
    %11 = vector.shape_cast %10 : vector<160x34xf32> to vector<4x40x34xf32>
    %12 = vector.extract_strided_slice %11 {offsets = [0, 0, 0], sizes = [4, 33, 34], strides = [1, 1, 1]} : vector<4x40x34xf32> to vector<4x33x34xf32>
    %13 = vector.shape_cast %12 : vector<4x33x34xf32> to vector<4x1122xf32>
    %c0_8 = arith.constant 0 : index
    %c0_9 = arith.constant 0 : index
    %14 = vector.load %arg7[%c0_8, %c0_9] : memref<12x1122xf32, #tpu.memory_space<vmem>>, vector<4x1122xf32>
    tpu.vector_store %arg7[%c0_8, %c0_9], %13 {strides = array<i32>} : memref<12x1122xf32, #tpu.memory_space<vmem>>, vector<4x1122xf32>,
    %15 = vector.extract_strided_slice %11 {offsets = [0, 1, 0], sizes = [4, 33, 34], strides = [1, 1, 1]} : vector<4x40x34xf32> to vector<4x33x34xf32>
    %16 = vector.shape_cast %15 : vector<4x33x34xf32> to vector<4x1122xf32>
    %c4 = arith.constant 4 : index
    %c0_10 = arith.constant 0 : index
    %17 = vector.load %arg7[%c4, %c0_10] : memref<12x1122xf32, #tpu.memory_space<vmem>>, vector<4x1122xf32>
    tpu.vector_store %arg7[%c4, %c0_10], %16 {strides = array<i32>} : memref<12x1122xf32, #tpu.memory_space<vmem>>, vector<4x1122xf32>,
    %18 = vector.extract_strided_slice %11 {offsets = [0, 2, 0], sizes = [4, 33, 34], strides = [1, 1, 1]} : vector<4x40x34xf32> to vector<4x33x34xf32>
    %19 = vector.shape_cast %18 : vector<4x33x34xf32> to vector<4x1122xf32>
    %c8 = arith.constant 8 : index
    %c0_11 = arith.constant 0 : index
    %20 = vector.load %arg7[%c8, %c0_11] : memref<12x1122xf32, #tpu.memory_space<vmem>>, vector<4x1122xf32>
    tpu.vector_store %arg7[%c8, %c0_11], %19 {strides = array<i32>} : memref<12x1122xf32, #tpu.memory_space<vmem>>, vector<4x1122xf32>,
    %c0_12 = arith.constant 0 : index
    %c0_13 = arith.constant 0 : index
    %21 = vector.load %arg5[%c0_12, %c0_13] : memref<8x1xf32, #tpu.memory_space<vmem>>, vector<8x1xf32>
    %c0_14 = arith.constant 0 : index
    %c0_15 = arith.constant 0 : index
    %c0_16 = arith.constant 0 : index
    %22 = vector.load %arg4[%c0_14, %c0_15, %c0_16] : memref<3x8x12xf32, #tpu.memory_space<vmem>>, vector<1x8x12xf32>
    %23 = vector.shape_cast %22 : vector<1x8x12xf32> to vector<8x12xf32>
    %c0_17 = arith.constant 0 : index
    %c0_18 = arith.constant 0 : index
    %24 = vector.load %arg7[%c0_17, %c0_18] : memref<12x1122xf32, #tpu.memory_space<vmem>>, vector<12x1088xf32>
    %cst_19 = arith.constant dense<0.000000e+00> : vector<8x1088xf32>
    %25 = tpu.matmul %23, %24, %cst_19 {dimension_numbers = #tpu.dot_dimension_numbers<[1], [0], [0], [1], [0, 0, 1, 1], [], []>} : vector<8x12xf32>, vector<12x1088xf32>, vector<8x1088xf32> -> vector<8x1088xf32>
    %c1 = arith.constant 1 : index
    %c0_20 = arith.constant 0 : index
    %c0_21 = arith.constant 0 : index
    %26 = vector.load %arg4[%c1, %c0_20, %c0_21] : memref<3x8x12xf32, #tpu.memory_space<vmem>>, vector<1x8x12xf32>
    %27 = vector.shape_cast %26 : vector<1x8x12xf32> to vector<8x12xf32>
    %c0_22 = arith.constant 0 : index
    %c1_23 = arith.constant 1 : index
    %28 = vector.load %arg7[%c0_22, %c1_23] : memref<12x1122xf32, #tpu.memory_space<vmem>>, vector<12x1088xf32>
    %cst_24 = arith.constant dense<0.000000e+00> : vector<8x1088xf32>
    %29 = tpu.matmul %27, %28, %cst_24 {dimension_numbers = #tpu.dot_dimension_numbers<[1], [0], [0], [1], [0, 0, 1, 1], [], []>} : vector<8x12xf32>, vector<12x1088xf32>, vector<8x1088xf32> -> vector<8x1088xf32>
    %30 = arith.addf %25, %29 : vector<8x1088xf32>
    %c2 = arith.constant 2 : index
    %c0_25 = arith.constant 0 : index
    %c0_26 = arith.constant 0 : index
    %31 = vector.load %arg4[%c2, %c0_25, %c0_26] : memref<3x8x12xf32, #tpu.memory_space<vmem>>, vector<1x8x12xf32>
    %32 = vector.shape_cast %31 : vector<1x8x12xf32> to vector<8x12xf32>
    %c0_27 = arith.constant 0 : index
    %c2_28 = arith.constant 2 : index
    %33 = vector.load %arg7[%c0_27, %c2_28] : memref<12x1122xf32, #tpu.memory_space<vmem>>, vector<12x1088xf32>
    %cst_29 = arith.constant dense<0.000000e+00> : vector<8x1088xf32>
    %34 = tpu.matmul %32, %33, %cst_29 {dimension_numbers = #tpu.dot_dimension_numbers<[1], [0], [0], [1], [0, 0, 1, 1], [], []>} : vector<8x12xf32>, vector<12x1088xf32>, vector<8x1088xf32> -> vector<8x1088xf32>
    %35 = arith.addf %30, %34 : vector<8x1088xf32>
    %36 = vector.shape_cast %35 : vector<8x1088xf32> to vector<8x32x34xf32>
    %37 = vector.extract_strided_slice %36 {offsets = [0, 0, 0], sizes = [8, 32, 32], strides = [1, 1, 1]} : vector<8x32x34xf32> to vector<8x32x32xf32>
    %38 = vector.shape_cast %21 : vector<8x1xf32> to vector<8x1x1xf32>
    %39 = vector.broadcast %38 : vector<8x1x1xf32> to vector<8x32x32xf32>
    %40 = arith.addf %37, %39 : vector<8x32x32xf32>
    %c0_30 = arith.constant 0 : index
    %c0_31 = arith.constant 0 : index
    %c0_32 = arith.constant 0 : index
    %c0_33 = arith.constant 0 : index
    %41 = vector.load %arg6[%c0_30, %c0_31, %c0_32, %c0_33] : memref<1x8x32x32xf32, #tpu.memory_space<vmem>>, vector<1x8x32x32xf32>
    %42 = vector.shape_cast %41 : vector<1x8x32x32xf32> to vector<8x32x32xf32>
    %43 = vector.shape_cast %40 : vector<8x32x32xf32> to vector<1x8x32x32xf32>
    tpu.vector_store %arg6[%c0_30, %c0_31, %c0_32, %c0_33], %43 {strides = array<i32>} : memref<1x8x32x32xf32, #tpu.memory_space<vmem>>, vector<1x8x32x32xf32>,
    return
  }
  func.func @transform_0(%arg0: i32) -> (i32, i32, i32, i32) {
    %c0_i32 = arith.constant 0 : i32
    %c0_i32_0 = arith.constant 0 : i32
    %c0_i32_1 = arith.constant 0 : i32
    %c0_i32_2 = arith.constant 0 : i32
    return %arg0, %c0_i32, %c0_i32_0, %c0_i32_1 : i32, i32, i32, i32
  }
  func.func @transform_1(%arg0: i32) -> (i32, i32) {
    %c0_i32 = arith.constant 0 : i32
    %c0_i32_0 = arith.constant 0 : i32
    %c0_i32_1 = arith.constant 0 : i32
    return %c0_i32, %c0_i32_0 : i32, i32
  }
  func.func @transform_2(%arg0: i32) -> (i32, i32) {
    %c0_i32 = arith.constant 0 : i32
    %c0_i32_0 = arith.constant 0 : i32
    %c0_i32_1 = arith.constant 0 : i32
    return %c0_i32, %c0_i32_0 : i32, i32
  }
  func.func @transform_3(%arg0: i32) -> (i32, i32, i32) {
    %c0_i32 = arith.constant 0 : i32
    %c0_i32_0 = arith.constant 0 : i32
    %c0_i32_1 = arith.constant 0 : i32
    %c0_i32_2 = arith.constant 0 : i32
    return %c0_i32, %c0_i32_0, %c0_i32_1 : i32, i32, i32
  }
  func.func @transform_4(%arg0: i32) -> (i32, i32) {
    %c0_i32 = arith.constant 0 : i32
    %c0_i32_0 = arith.constant 0 : i32
    %c0_i32_1 = arith.constant 0 : i32
    return %c0_i32, %c0_i32_0 : i32, i32
  }
  func.func @transform_5(%arg0: i32) -> (i32, i32, i32, i32) {
    %c0_i32 = arith.constant 0 : i32
    %c0_i32_0 = arith.constant 0 : i32
    %c0_i32_1 = arith.constant 0 : i32
    %c0_i32_2 = arith.constant 0 : i32
    return %arg0, %c0_i32, %c0_i32_0, %c0_i32_1 : i32, i32, i32, i32
  }
}

</mosaic_0001>

<bundles_post_ra>
// kernel: tpu_custom_call.1
= control target key start
LH: loop header
LB: loop body
LE: loop exit
PB: predicated region body
PF: predicated region fallthrough
CT: control target
= control target key end

     0   :  { %10 = vsyncpa [#allocation4], 0  ;;  %s7578_s0 = inlined_call_operand.hbm [shape: f32[2,4,16,16], index: 0, kind: input, shape index: {}]   ;;  %s7579_s1 = inlined_call_operand.hbm [shape: f32[16,40], index: 1, kind: input, shape index: {}]   ;;  %s7580_s2 = inlined_call_operand.vmem [shape: f32[16,34], index: 2, kind: input, shape index: {}]   ;;  %s7581_s3 = inlined_call_operand.hbm [shape: f32[3,8,12], index: 3, kind: input, shape index: {}]   ;;  %s7582_s4 = inlined_call_operand.vmem [shape: f32[8,1], index: 4, kind: input, shape index: {}]   ;;  %s7583_s5 = inlined_call_operand.hbm [shape: f32[2,8,32,32], index: 5, kind: output, shape index: {}]  }
   0x1   :  { %12 = vsyncpa [#allocation4 + $0x1], 0 }
   0x2   :  { %13 = vsyncpa [#allocation7], 0 }
   0x3   :  { %14 = vsyncpa [#allocation5], 0 }
   0x4   :  { %16 = vsyncpa [#allocation5 + $0x1], 0  ;;  %s5562_s18 = smov 0   ;;  %s5564_s19 = smov 0  }
   0x5   :  { %s5566_s20 = smov 0   ;;  %s5568_s21 = smov 0  }
   0x6 LB: > { %s5583_s22 = sadd.s32 4294967295, %s5451_s21   ;;  %s4746_s23 = sadd.s32 4294967294, %s5451_s21   ;;  %s5451_s21 = sphi %s5568_s21, %s7749_s21   ;;  %s5447_s20 = sphi %s5566_s20, %s7748_s20   ;;  %s5443_s19 = sphi %s5564_s19, %s7747_s19   ;;  %s5439_s18 = sphi %s5562_s18, %s7746_s18  }
   0x7   : > { %p42_p0 = scmp.ne.s32.totalorder %s5443_s19, %s5439_s18  ;;  %p7584_p1 = scmp.eq.s32.totalorder %s5583_s22, 0 }
   0x8   : > { %p156_p3 = scmp.eq.s32.totalorder %s4746_s23, 1  ;;  %p4747_p5 = scmp.ge.s32.totalorder %s5451_s21, 1 }
   0x9   : > { %p5592_p4 = por %p7584_p1, %p42_p0  ;;  %p163_p7 = scmp.lt.s32.totalorder %s5451_s21, 3 }
   0xa   : > { %p5597_p6 = por %p156_p3, %p42_p0  ;;  %s5453_s27 = smov [#allocation6]  }
   0xb   : > { %s7619_s24 = scalar_select %p5592_p4, 1, 0 }
   0xc   : > { %s7620_s25 = scalar_select %p5597_p6, 1, 0 }
   0xd   : > { %p5602_p8 = pnand %p4747_p5, %p163_p7  ;;  %s175_s28 = sshll.u32 %s5453_s27, 4  ;;  %s5606_s28 = int_to_ptr.vmem [resolvable:$true] %s175_s28 }
   0xe   : > { %s5454_s30 = smov [#allocation8]   ;;  %s5295_s9 = scalar_lea.hbm %s7579_s1, 256 }
   0xf   : > { %p5072_p9 = pneg %p5602_p8  ;;  %s191_s6 = sshll.u32 %s5454_s30, 4  ;;  %s5617_s6 = int_to_ptr.vmem [resolvable:$true] %s191_s6 }
  0x10   : > { %p5296_p12 = scmp.ne.s32.totalorder %s7579_s1, %s5295_s9  ;;  %p5302_p5 = scmp.lt.u32.totalorder %s5295_s9, %s7579_s1 }
  0x11   : > { %p5613_p11 = pnand %p5072_p9, %p7584_p1 }
  0x13   : > { %p5297_p13 = pneg %p5613_p11 }
  0x15   : > { %p5298_p0 = pnand %p5297_p13, %p5296_p12 }
  0x17   : > { %p5299_p3 = pneg %p5298_p0 }
  0x19   : > { %p5304_p7 = pnand %p5302_p5, %p5299_p3 }
  0x1b   : > { %5307 = shalt.err (!%p5304_p7)
}
  0x1c   : > { %s5308_s14 = scalar_lea.vmem %s5606_s28, 256  ;;  %p5316_p2 = scmp.lt.s32.totalorder %s5606_s28, %s5606_s28 }
  0x1d   : > { %p5309_p9 = scmp.ne.s32.totalorder %s5606_s28, %s5308_s14  ;;  %p5317_p12 = scmp.lt.s32.totalorder %s5308_s14, %s5308_s14 }
  0x1f   : > { %p5311_p10 = pnand %p5309_p9, %p5297_p13  ;;  %p5318_p0 = por %p5317_p12, %p5316_p2 }
  0x21   : > { %p5312_p1 = pneg %p5311_p10 }
  0x23   : > { %p5319_p6 = pnand %p5318_p0, %p5312_p1 }
  0x25   : > { %5322 = shalt.err (!%p5319_p6)
}
  0x26   : > { %s5455_s15 = smov 128   ;;  %s5456_s16 = smov 8  }
  0x27   : > { %5075 = dma.hbm_to_vmem [thread:$0]  (!%p5613_p11), %s7579_s1, 256, %s5606_s28, [#allocation7], %s5455_s15, %s5455_s15, %s5456_s16  }
  0x28   : > { %s5323_s7 = scalar_lea.hbm %s7581_s3, 384 }
  0x29   : > { %p5324_p1 = scmp.ne.s32.totalorder %s7581_s3, %s5323_s7  ;;  %p5330_p10 = scmp.lt.u32.totalorder %s5323_s7, %s7581_s3 }
  0x2b   : > { %p5326_p2 = pnand %p5324_p1, %p5297_p13 }
  0x2d   : > { %p5327_p6 = pneg %p5326_p2 }
  0x2f   : > { %p5332_p3 = pnand %p5330_p10, %p5327_p6 }
  0x31   : > { %5335 = shalt.err (!%p5332_p3)
}
  0x32   : > { %s5336_s28 = scalar_lea.vmem %s5617_s6, 384  ;;  %p5344_p12 = scmp.lt.s32.totalorder %s5617_s6, %s5617_s6 }
  0x33   : > { %p5337_p5 = scmp.ne.s32.totalorder %s5617_s6, %s5336_s28  ;;  %p5345_p0 = scmp.lt.s32.totalorder %s5336_s28, %s5336_s28 }
  0x35   : > { %p5339_p7 = pnand %p5337_p5, %p5297_p13  ;;  %p5346_p1 = por %p5345_p0, %p5344_p12 }
  0x37   : > { %p5340_p9 = pneg %p5339_p7 }
  0x39   : > { %p5347_p2 = pnand %p5346_p1, %p5340_p9 }
  0x3b   : > { %5350 = shalt.err (!%p5347_p2)
}
  0x3c   : > { %5078 = dma.hbm_to_vmem [thread:$0]  (!%p5613_p11), %s7581_s3, 384, %s5617_s6, [#allocation7], %s5455_s15, %s5455_s15, %s5456_s16  }
  0x3d   : > { %s5678_s29 = sadd.s32 1, %s5451_s21   ;;  %s29_s14 = sadd.s32 1, %s5447_s20 }
  0x3e   : > { %s26_s17 = ssub.s32 %s5451_s21, %s5678_s29  ;;  %p36_p13 = scmp.ne.s32.totalorder %s5447_s20, %s5443_s19 }
  0x3f   : > { %p27_p6 = scmp.eq.s32.totalorder %s26_s17, 0  ;;  %p37_p10 = scmp.eq.s32.totalorder %s5451_s21, 0 }
  0x40   : > { %p7623_p3 = scmp.eq.s32.totalorder %s5583_s22, 1  ;;  %p5089_p7 = scmp.lt.s32.totalorder %s5451_s21, 2 }
  0x41   : > { %s5694_s27 = scalar_select %p27_p6, %s5447_s20, %s29_s14  }
  0x42   : > { %p5688_p5 = por %p7623_p3, %p36_p13  ;;  %p38_p9 = por %p37_p10, %p36_p13 }
  0x43   : > { %s208_s30 = sand.u32 1, %s5447_s20   ;;  %s4834_s6 = sshll.u32 %s5451_s21, 10 }
  0x44   : > { %s7624_s23 = scalar_select %p5688_p5, 1, 0 }
  0x45   : > { %s4751_s7 = sshll.u32 %s208_s30, 6  ;;  %s5701_s10 = scalar_lea.hbm %s7578_s0, %s4834_s6 }
  0x46   : > { %s212_s11 = scalar_lea.vmem [#allocation3], %s4751_s7  ;;  %p5705_p11 = pnand %p5089_p7, %p38_p9 }
  0x47   : > { %s219_s28 = sshll.u32 %s212_s11, 4  ;;  %s5709_s13 = scalar_lea.sflag [#allocation4], %s208_s30  ;;  %s5703_s28 = int_to_ptr.vmem [resolvable:$true] %s219_s28 }
  0x48   : > { %s5351_s14 = scalar_lea.hbm %s5701_s10, 1024  ;;  %p5353_p0 = pneg %p5705_p11 }
  0x49   : > { %p5352_p12 = scmp.ne.s32.totalorder %s5701_s10, %s5351_s14  ;;  %s5356_s6 = scalar_lea.hbm %s7578_s0, 2048 }
  0x4a   : > { %p5357_p13 = scmp.lt.u32.totalorder %s5701_s10, %s7578_s0  ;;  %p5358_p6 = scmp.lt.u32.totalorder %s5356_s6, %s5351_s14 }
  0x4b   : > { %p5354_p1 = pnand %p5353_p0, %p5352_p12  ;;  %p5360_p3 = scmp.lt.u32.totalorder %s5351_s14, %s5701_s10 }
  0x4c   : > { %p5359_p10 = por %p5358_p6, %p5357_p13 }
  0x4d   : > { %p5355_p2 = pneg %p5354_p1 }
  0x4e   : > { %p5361_p7 = por %p5360_p3, %p5359_p10 }
  0x50   : > { %p5362_p9 = pnand %p5361_p7, %p5355_p2 }
  0x52   : > { %5365 = shalt.err (!%p5362_p9)
}
  0x53   : > { %s5366_s30 = scalar_lea.vmem %s5703_s28, 1024  ;;  %s5457_s11 = smov [#allocation3]  }
  0x54   : > { %p5367_p12 = scmp.ne.s32.totalorder %s5703_s28, %s5366_s30  ;;  %s5371_s17 = sshll.u32 %s5457_s11, 4  ;;  %s5372_s17 = int_to_ptr.vmem [resolvable:$false] %s5371_s17 }
  0x55   : > { %s5373_s7 = scalar_lea.vmem %s5372_s17, 2048  ;;  %p5374_p4 = scmp.lt.s32.totalorder %s5703_s28, %s5372_s17 }
  0x56   : > { %p5369_p1 = pnand %p5367_p12, %p5353_p0  ;;  %p5375_p13 = scmp.lt.s32.totalorder %s5373_s7, %s5366_s30 }
  0x58   : > { %p5370_p5 = pneg %p5369_p1  ;;  %p5376_p6 = por %p5375_p13, %p5374_p4 }
  0x5a   : > { %p5377_p10 = pnand %p5376_p6, %p5370_p5 }
  0x5c   : > { %5380 = shalt.err (!%p5377_p10)
}
  0x5d   : > { %5082 = dma.hbm_to_vmem [thread:$0]  (!%p5705_p11), %s5701_s10, 1024, %s5703_s28, %s5709_s13, %s5455_s15, %s5455_s15, %s5456_s16  }
  0x5e   : > { %231 = sbr.rel (%p5602_p8) target bundleno = 1760 (0x6e0), region = 40 }
  0x65   : > { %s5743_s14 = sand.u32 1, %s5443_s19   ;;  %p7626_p4 = scmp.ne.s32.totalorder %s7619_s24, 0 }
  0x66   : > { %s4755_s6 = sshll.u32 %s5743_s14, 6  ;;  %s234_s8 = scalar_lea.sflag [#allocation4], %s5743_s14 }
  0x67   : > { %s237_s9 = scalar_lea.vmem [#allocation3], %s4755_s6 }
  0x68   : > { %5426 = dma.done.wait (%p7626_p4), %s234_s8, 1024  }
  0x69   : > { %5428 = vsyncadd (%p7626_p4), %s234_s8, 4294966272  ;;  %p7627_p5 = scmp.eq.s32.totalorder %s5583_s22, 0 }
  0x6b   : > { %5430 = dma.done.wait (%p7627_p5), [#allocation7], 640   ;;  %p7628_p11 = pmov %p7627_p5 }
  0x6c   : > { %v272_v0 = vld [vmem:[%s237_s9] sm:$0xff]  ;;  %v274_v1 = vld [vmem:[%s237_s9 + $0x10] sm:$0xff]  ;;  %v273_v2 = vld [vmem:[%s237_s9 + $0x8] sm:$0xff]  ;;  %vm410_vm0 = vcmask 130048   ;;  %v7587_v50 = vmov 0.0   ;;  %vm1412_vm1 = vcmask 1046528  }
  0x6d   : > { %5432 = vsyncadd (%p7628_p11), [#allocation7], 4294966656  ;;  %280 = vxpose.xlu0.b32.start [1/2] (short) (narrow) %v272_v0, 16  ;;  %312 = vxpose.xlu1.b32.start [1/2] (short) (narrow) %v274_v1, 16  ;;  %v275_v3 = vld [vmem:[%s237_s9 + $0x18] sm:$0xff]  ;;  %v408_v4 = vld [vmem:[#allocation6] sm:$0xff] }
  0x6e   : > { %v409_v5 = vld [vmem:[#allocation6 + $0x8] sm:$0xff]  ;;  %v276_v7 = vld [vmem:[%s237_s9 + $0x20] sm:$0xff]  ;;  %v278_v8 = vld [vmem:[%s237_s9 + $0x30] sm:$0xff]  ;;  %2673 = vmatprep.mubr.f32.mxu0 %v7587_v50  ;;  %vm1962_vm2 = vcmask 1045504   ;;  %s5461_s10 = smov 76   ;;  %s5462_s28 = smov 8  }
  0x6f   : > { %v4948_v6 = vpack.c.bf16 %v409_v5, %v408_v4  ;;  %v277_v9 = vld [vmem:[%s237_s9 + $0x28] sm:$0xff]  ;;  %v279_v10 = vld [vmem:[%s237_s9 + $0x38] sm:$0xff]  ;;  %v668_v19 = vld [vmem:[%s7580_s2] sm:$0xff]  ;;  %s5463_s12 = smov 42   ;;  %s5464_s13 = smov 68   ;;  %vm1319_vm3 = vcmask 277504  }
  0x70   : > { %v669_v20 = vld [vmem:[%s7580_s2 + $0x8] sm:$0xff]  ;;  %s5465_s30 = smov 34   ;;  %s5466_s11 = smov 102   ;;  %vm1321_vm4 = vcmask 556032   ;;  %vm1325_vm5 = vcmask 64512   ;;  %vm1323_vm6 = vcmask 834560  }
  0x71   : > { %281 = vxpose.xlu0.b32.end [2/2] (short) (narrow) %v273_v2, 16  ;;  %313 = vxpose.xlu1.b32.end [2/2] (short) (narrow) %v275_v3, 16  ;;  %v4952_v21 = vpack.c.bf16 %v669_v20, %v668_v19  ;;  %s7610_s17 = smov 32   ;;  %s5468_s7 = smov 110   ;;  %vm1327_vm7 = vcmask 343040   ;;  %vm1329_vm8 = vcmask 621568  }
  0x72   : > { %4949 = vmatprep.subr.bf16.mxu1 %v4948_v6  ;;  %s7600_s6 = smov 100   ;;  %s7602_s8 = smov 108   ;;  %vm1331_vm9 = vcmask 900096   ;;  %vm7618_vm10 = vcmask 261120   ;;  %vm7617_vm11 = vcmask 539648   ;;  %vm7616_vm12 = vcmask 818176  }
  0x73   : > { %4951 = vmatpush3.bf16.msra.mxu1 %v4948_v6  ;;  %s7596_s9 = smov 40   ;;  %s5472_s24 = smov 92   ;;  %vm7612_vm13 = vcmask 48128   ;;  %vm7615_vm14 = vcmask 326656   ;;  %vm7613_vm15 = vcmask 605184  }
  0x74   : > { %4953 = vmatprep.subr.bf16.mxu1 %v4952_v21  ;;  %s5473_s26 = smov 16   ;;  %s7598_s15 = smov 74  }
  0x75   : > { %344 = vxpose.xlu0.b32.start [1/2] (short) (narrow) %v276_v7, 16  ;;  %376 = vxpose.xlu1.b32.start [1/2] (short) (narrow) %v278_v8, 16  ;;  %s5475_s16 = smov 84   ;;  %p7743_p0 = scmp.ne.s32.totalorder %s7624_s23, 0 }
  0x79   : > { %345 = vxpose.xlu0.b32.end [2/2] (short) (narrow) %v277_v9, 16  ;;  %377 = vxpose.xlu1.b32.end [2/2] (short) (narrow) %v279_v10, 16 }
  0xed   : > { %v296_v11 = vpop.trf.xlu0  ;;  %v328_v12 = vpop.trf.xlu1 }
  0xee   : > { %4881 = vmatprep.mubr.msk.f32.mxu1 %vm410_vm0, %v296_v11 }
  0xf1   : > { %v297_v13 = vpop.trf.xlu0  ;;  %v329_v14 = vpop.trf.xlu1 }
  0xf2   : > { %4882 = vmatmul.mubr.msk.f32.vlgmr.msra.gmra.mrb[0].mxu1 %vm410_vm0, %v297_v13 }
  0xf3   : > { %4884 = vmatprep.mubr.msk.f32.mxu1 %vm410_vm0, %v328_v12  ;;  %4955 = vmatpush3.bf16.msra.mxu1 %v4952_v21 }
  0xf5   : > { %v360_v15 = vpop.trf.xlu0  ;;  %v392_v16 = vpop.trf.xlu1 }
  0xf6   : > { %4885 = vmatmul.mubr.msk.f32.gmra.mrb[2].mxu1 %vm410_vm0, %v329_v14 }
  0xf7   : > { %4887 = vmatprep.mubr.msk.f32.mxu1 %vm410_vm0, %v360_v15 }
  0xf9   : > { %v361_v17 = vpop.trf.xlu0  ;;  %v393_v18 = vpop.trf.xlu1 }
  0xfa   : > { %4888 = vmatmul.mubr.msk.f32.gmra.mrb[4].mxu1 %vm410_vm0, %v361_v17 }
  0xfb   : > { %4890 = vmatprep.mubr.msk.f32.mxu1 %vm410_vm0, %v392_v16 }
  0xfe   : > { %4891 = vmatmul.mubr.msk.f32.gmra.mrb[6].mxu1 %vm410_vm0, %v393_v18 }
 0x1c5   : > { %v4883_v22 = vpop.f32.mrb[0].mxu1 }
 0x1c6   : > { %v501_v23 = vpop.f32.mrb[1].mxu1 }
 0x1c7   : > { %540 = vxpose.xlu0.b32.start [1/2] (short) (narrow) %v501_v23, 40 }
 0x1c9   : > { %v4886_v24 = vpop.f32.mrb[2].mxu1 }
 0x1ca   : > { %v511_v25 = vpop.f32.mrb[3].mxu1 }
 0x1cb   : > { %541 = vxpose.xlu0.b32.end [2/2] (short) (narrow) %v4883_v22, 40  ;;  %572 = vxpose.xlu1.b32.start [1/2] (short) (narrow) %v511_v25, 40 }
 0x1cd   : > { %v4889_v26 = vpop.f32.mrb[4].mxu1 }
 0x1ce   : > { %v521_v27 = vpop.f32.mrb[5].mxu1 }
 0x1cf   : > { %573 = vxpose.xlu1.b32.end [2/2] (short) (narrow) %v4886_v24, 40 }
 0x1d1   : > { %v4892_v28 = vpop.f32.mrb[6].mxu1 }
 0x1d2   : > { %v531_v29 = vpop.f32.mrb[7].mxu1 }
 0x1d8   : > { %604 = vxpose.xlu0.b32.start [1/2] (short) (narrow) %v521_v27, 40 }
 0x1dc   : > { %605 = vxpose.xlu0.b32.end [2/2] (short) (narrow) %v4889_v26, 40  ;;  %636 = vxpose.xlu1.b32.start [1/2] (short) (narrow) %v531_v29, 40  ;;  %v5459_v29 = vmov 1983009808  }
 0x1e0   : > { %637 = vxpose.xlu1.b32.end [2/2] (short) (narrow) %v4892_v28, 40 }
 0x247   : > { %v556_v30 = vpop.trf.xlu0 }
 0x248   : > { %4897 = vmatprep.mubr.msk.f32.mxu1 %vm410_vm0, %v556_v30  ;;  %v898_v30 = vunpack.c.l.s4 %v5459_v29 }
 0x24b   : > { %v557_v31 = vpop.trf.xlu0  ;;  %v588_v32 = vpop.trf.xlu1 }
 0x24c   : > { %4898 = vmatmul.mubr.msk.f32.vlgmr.msra.gmra.mrb[8].mxu1 %vm410_vm0, %v557_v31  ;;  %v900_v31 = vlaneseq }
 0x24f   : > { %v558_v33 = vpop.trf.xlu0  ;;  %v589_v34 = vpop.trf.xlu1 }
 0x250   : > { %4900 = vmatprep.mubr.msk.f32.mxu1 %vm410_vm0, %v558_v33 }
 0x253   : > { %v559_v35 = vpop.trf.xlu0  ;;  %v590_v36 = vpop.trf.xlu1 }
 0x254   : > { %4901 = vmatmul.mubr.msk.f32.gmra.mrb[10].mxu1 %vm410_vm0, %v559_v35 }
 0x257   : > { %v560_v37 = vpop.trf.xlu0  ;;  %v591_v38 = vpop.trf.xlu1 }
 0x258   : > { %4903 = vmatprep.mubr.msk.f32.mxu1 %vm410_vm0, %v560_v37 }
 0x259   : > { %4904 = vmatmul.mubr.msk.f32.gmra.mrb[12].mxu1 %vm410_vm0, %v588_v32 }
 0x25a   : > { %4906 = vmatprep.mubr.msk.f32.mxu1 %vm410_vm0, %v589_v34 }
 0x25b   : > { %v620_v39 = vpop.trf.xlu0  ;;  %v592_v40 = vpop.trf.xlu1 }
 0x25d   : > { %4907 = vmatmul.mubr.msk.f32.gmra.mrb[14].mxu1 %vm410_vm0, %v590_v36 }
 0x25e   : > { %4909 = vmatprep.mubr.msk.f32.mxu1 %vm410_vm0, %v591_v38 }
 0x25f   : > { %v621_v41 = vpop.trf.xlu0  ;;  %v652_v42 = vpop.trf.xlu1 }
 0x261   : > { %4910 = vmatmul.mubr.msk.f32.gmra.mrb[16].mxu1 %vm410_vm0, %v592_v40 }
 0x262   : > { %4912 = vmatprep.mubr.msk.f32.mxu1 %vm410_vm0, %v620_v39 }
 0x263   : > { %v622_v43 = vpop.trf.xlu0  ;;  %v653_v44 = vpop.trf.xlu1 }
 0x265   : > { %4913 = vmatmul.mubr.msk.f32.gmra.mrb[18].mxu1 %vm410_vm0, %v621_v41 }
 0x266   : > { %4915 = vmatprep.mubr.msk.f32.mxu1 %vm410_vm0, %v622_v43 }
 0x267   : > { %v623_v45 = vpop.trf.xlu0  ;;  %v654_v46 = vpop.trf.xlu1 }
 0x269   : > { %4916 = vmatmul.mubr.msk.f32.gmra.mrb[20].mxu1 %vm410_vm0, %v623_v45 }
 0x26b   : > { %v624_v47 = vpop.trf.xlu0  ;;  %v655_v48 = vpop.trf.xlu1 }
 0x26c   : > { %4918 = vmatprep.mubr.msk.f32.mxu1 %vm410_vm0, %v624_v47  ;;  %v5896_v47 = vshrl.u32 %v900_v31, 7 }
 0x26d   : > { %4919 = vmatmul.mubr.msk.f32.gmra.mrb[22].mxu1 %vm410_vm0, %v652_v42 }
 0x26e   : > { %4921 = vmatprep.mubr.msk.f32.mxu1 %vm410_vm0, %v653_v44  ;;  %7629 = vst [vmem:[#allocation13_spill] sm:$0xff] %v5896_v47 }
 0x26f   : > { %v656_v49 = vpop.trf.xlu1 }
 0x271   : > { %4922 = vmatmul.mubr.msk.f32.gmra.mrb[24].mxu1 %vm410_vm0, %v654_v46  ;;  %v899_v46 = vunpack.c.0.s8 %v898_v30 }
 0x272   : > { %4924 = vmatprep.mubr.msk.f32.mxu1 %vm410_vm0, %v655_v48 }
 0x275   : > { %4925 = vmatmul.mubr.msk.f32.gmra.mrb[26].mxu1 %vm410_vm0, %v656_v49 }
 0x31f   : > { %v5790_v51 = vpop.f32.mrb[8].mxu1 }
 0x320   : > { %v1414_v52 = vrot.slane %v5790_v51, 1  ;;  %v1964_v53 = vrot.slane %v5790_v51, 2  ;;  %v5794_v54 = vpop.f32.mrb[9].mxu1 }
 0x321   : > { %v1413_v55 = vrot.slane %v5794_v54, 1  ;;  %v1963_v56 = vrot.slane %v5794_v54, 2 }
 0x323   : > { %v5799_v57 = vsel %vm1412_vm1, %v1413_v55, %v1414_v52  ;;  %v5802_v58 = vsel %vm1962_vm2, %v1963_v56, %v1964_v53 }
 0x327   : > { %v5804_v59 = vpop.f32.mrb[10].mxu1 }
 0x328   : > { %v1418_v60 = vrot.slane %v5804_v59, 1  ;;  %v1968_v61 = vrot.slane %v5804_v59, 2  ;;  %v5808_v62 = vpop.f32.mrb[11].mxu1 }
 0x329   : > { %v1416_v63 = vrot.slane %v5808_v62, 1  ;;  %v1966_v0 = vrot.slane %v5808_v62, 2 }
 0x32b   : > { %v5813_v1 = vsel %vm1412_vm1, %v1414_v52, %v1416_v63  ;;  %v5816_v2 = vsel %vm1412_vm1, %v1416_v63, %v1418_v60  ;;  %v5819_v3 = vsel %vm1962_vm2, %v1964_v53, %v1966_v0  ;;  %v5822_v4 = vsel %vm1962_vm2, %v1966_v0, %v1968_v61 }
 0x32c   : > { %v5824_v5 = vpop.f32.mrb[12].mxu1  ;;  %v5460_v53 = vmov 1934713408  }
 0x32d   : > { %v5826_v6 = vpop.f32.mrb[13].mxu1  ;;  %v1422_v15 = vrot.slane %v5824_v5, 1  ;;  %v1972_v16 = vrot.slane %v5824_v5, 2  ;;  %v930_v55 = vunpack.c.l.s4 %v5460_v53 }
 0x32e   : > { %v1420_v7 = vrot.slane %v5826_v6, 1  ;;  %v1970_v8 = vrot.slane %v5826_v6, 2 }
 0x32f   : > { %v931_v29 = vunpack.c.0.s8 %v930_v55 }
 0x330   : > { %v5833_v9 = vsel %vm1412_vm1, %v1418_v60, %v1420_v7  ;;  %v5838_v10 = vsel %vm1962_vm2, %v1968_v61, %v1970_v8  ;;  %v5840_v11 = vpop.f32.mrb[14].mxu1 }
 0x331   : > { %v1425_v12 = vrot.slane %v5840_v11, 1  ;;  %v1975_v13 = vrot.slane %v5840_v11, 2  ;;  %v5844_v14 = vpop.f32.mrb[15].mxu1 }
 0x332   : > { %v1423_v17 = vrot.slane %v5844_v14, 1  ;;  %v1973_v18 = vrot.slane %v5844_v14, 2 }
 0x334   : > { %v5851_v19 = vsel %vm1412_vm1, %v1422_v15, %v1423_v17  ;;  %v5854_v20 = vsel %vm1412_vm1, %v1423_v17, %v1425_v12  ;;  %v5857_v21 = vsel %vm1962_vm2, %v1972_v16, %v1973_v18  ;;  %v5860_v22 = vsel %vm1962_vm2, %v1973_v18, %v1975_v13  ;;  %v5862_v23 = vpop.f32.mrb[16].mxu1 }
 0x335   : > { %v7590_v24 = vrot.slane %v5862_v23, 1  ;;  %v7589_v25 = vrot.slane %v5862_v23, 2  ;;  %v5866_v26 = vpop.f32.mrb[17].mxu1 }
 0x336   : > { %v1427_v27 = vrot.slane %v5866_v26, 1  ;;  %v1977_v28 = vrot.slane %v5866_v26, 2 }
 0x338   : > { %v5870_v32 = vpop.f32.mrb[18].mxu1  ;;  %v5873_v33 = vsel %vm1412_vm1, %v1425_v12, %v1427_v27  ;;  %v5878_v34 = vsel %vm1412_vm1, %v1427_v27, %v7590_v24  ;;  %v5881_v35 = vsel %vm1962_vm2, %v1975_v13, %v1977_v28  ;;  %v5886_v36 = vsel %vm1962_vm2, %v1977_v28, %v7589_v25 }
 0x339   : > { %v1432_v39 = vrot.slane %v5870_v32, 1  ;;  %v1982_v40 = vrot.slane %v5870_v32, 2  ;;  %v846_v41 = vpop.f32.mrb[19].mxu1 }
 0x33a   : > { %v895_v42 = vcombine.low %v5794_v54, %v846_v41  ;;  %v896_v43 = vcombine.high %v5794_v54, %v846_v41  ;;  %v1431_v44 = vrot.slane %v846_v41, 1  ;;  %v1981_v45 = vrot.slane %v846_v41, 2 }
 0x33c   : > { %v5899_v48 = vsel %vm1412_vm1, %v1431_v44, %v1432_v39  ;;  %v5902_v49 = vsel %vm1962_vm2, %v1981_v45, %v1982_v40  ;;  %v5904_v52 = vpop.f32.mrb[20].mxu1  ;;  %v5933_v45 = vsub.s32 %v899_v46, %v5896_v47 }
 0x33d   : > { %v1436_v60 = vrot.slane %v5904_v52, 1  ;;  %v1986_v61 = vrot.slane %v5904_v52, 2  ;;  %v856_v63 = vpop.f32.mrb[21].mxu1 }
 0x33e   : > { %v1031_v0 = vcombine.low %v5808_v62, %v856_v63  ;;  %v1032_v12 = vcombine.high %v5808_v62, %v856_v63  ;;  %v1434_v13 = vrot.slane %v856_v63, 1  ;;  %v1984_v15 = vrot.slane %v856_v63, 2 }
 0x340   : > { %v5919_v18 = vsel %vm1412_vm1, %v1432_v39, %v1434_v13  ;;  %v5922_v27 = vsel %vm1412_vm1, %v1434_v13, %v1436_v60  ;;  %v4920_v28 = vpop.f32.mrb[22].mxu1  ;;  %v5925_v30 = vsel %vm1962_vm2, %v1982_v40, %v1984_v15  ;;  %v5928_v62 = vsel %vm1962_vm2, %v1984_v15, %v1986_v61 }
 0x341   : > { %v911_v31 = vcombine.low %v5824_v5, %v4920_v28  ;;  %v912_v41 = vcombine.high %v5824_v5, %v4920_v28  ;;  %v866_v44 = vpop.f32.mrb[23].mxu1  ;;  %v5946_v15 = vsub.s32 %v931_v29, %v5896_v47  ;;  %v5962_v29 = vrot.slane %v895_v42, %v5933_v45 }
 0x342   : > { %v1167_v39 = vcombine.low %v5826_v6, %v866_v44  ;;  %v1438_v53 = vrot.slane %v866_v44, 1  ;;  %v1988_v63 = vrot.slane %v866_v44, 2  ;;  %v5972_v56 = vrot.slane %v1031_v0, %v5933_v45 }
 0x343   : > { %v5978_v42 = vrot.slane %v1032_v12, %v5933_v45  ;;  %v1990_v54 = vrot.slane %v4920_v28, 2  ;;  %v926_v5 = vrot.slane %v912_v41, %v5933_v45  ;;  %v919_v25 = vrot.slane %v911_v31, %v5933_v45 }
 0x344   : > { %v5937_v55 = vsel %vm1412_vm1, %v1436_v60, %v1438_v53  ;;  %v5941_v40 = vcombine.low %v1420_v7, %v1438_v53  ;;  %v5943_v13 = vpop.f32.mrb[24].mxu1  ;;  %v5955_v60 = vsel %vm1962_vm2, %v1986_v61, %v1988_v63  ;;  %v5959_v7 = vcombine.low %v1970_v8, %v1988_v63 }
 0x345   : > { %v876_v53 = vpop.f32.mrb[25].mxu1  ;;  %v1047_v44 = vcombine.low %v5840_v11, %v5943_v13  ;;  %v910_v61 = vrot.slane %v896_v43, %v5933_v45  ;;  %v1048_v6 = vcombine.high %v5840_v11, %v5943_v13  ;;  %v1443_v8 = vrot.slane %v5943_v13, 1 }
 0x346   : > { %7630 = vst [vmem:[#allocation14_spill] sm:$0xff] %v5959_v7  ;;  %v1440_v63 = vrot.slane %v4920_v28, 1  ;;  %v1993_v46 = vrot.slane %v5943_v13, 2  ;;  %v979_v43 = vcombine.low %v5844_v14, %v876_v53  ;;  %v980_v0 = vcombine.high %v5844_v14, %v876_v53 }
 0x347   : > { %v1441_v16 = vrot.slane %v876_v53, 1  ;;  %v1991_v11 = vrot.slane %v876_v53, 2  ;;  %v5989_v28 = vrot.slane %v1167_v39, %v5933_v45  ;;  %v7634_v39 = vrot.slane %v5862_v23, 2 }
 0x348   : > { %v4926_v17 = vpop.f32.mrb[26].mxu1  ;;  %v944_v47 = vcombine.high %v910_v61, %v926_v5  ;;  %v6017_v7 = vrot.slane %v1047_v44, %v5933_v45  ;;  %v6033_v44 = vrot.slane %v980_v0, %v5933_v45 }
 0x349   : > { %v5984_v38 = vpop.f32.mrb[27].mxu1  ;;  %v1175_v37 = vcombine.low %v5862_v23, %v4926_v17  ;;  %v1447_v50 = vrot.slane %v4926_v17, 1  ;;  %v1997_v12 = vrot.slane %v4926_v17, 2  ;;  %7631 = vst [vmem:[#allocation15_spill] sm:$0xff] %v5989_v28  ;;  %v5992_v13 = vsel %vm1412_vm1, %v1440_v63, %v1441_v16 }
 0x34a   : > { %v5995_v41 = vsel %vm1412_vm1, %v1441_v16, %v1443_v8  ;;  %v5998_v14 = vsel %vm1962_vm2, %v1990_v54, %v1991_v11  ;;  %v6001_v53 = vsel %vm1962_vm2, %v1991_v11, %v1993_v46  ;;  %v7633_v17 = vrot.slane %v5862_v23, 1 }
 0x34b   : > { %v6004_v24 = vrot.slane %v1175_v37, %v5933_v45  ;;  %v6012_v63 = vcombine.low %v7634_v39, %v1997_v12  ;;  %v943_v16 = vcombine.low %v910_v61, %v926_v5  ;;  %v6025_v23 = vrot.slane %v1048_v6, %v5933_v45 }
 0x34c   : > { %v6008_v31 = vcombine.low %v7633_v17, %v1447_v50  ;;  %v1445_v17 = vrot.slane %v5984_v38, 1  ;;  %v6028_v39 = vrot.slane %v979_v43, %v5933_v45  ;;  %v958_v5 = vrot.slane %v944_v47, %v5946_v15 }
 0x34d   : > { %7632 = vst [vmem:[#allocation16_spill] sm:$0xff] %v6004_v24  ;;  %7635 = vst [vmem:[#allocation17_spill] sm:$0xff] %v6012_v63  ;;  %v951_v61 = vrot.slane %v943_v16, %v5946_v15  ;;  %v1995_v54 = vrot.slane %v5984_v38, 2  ;;  %v7636_v16 = vmov 0.0   ;;  %v927_v24 = vcombine.low %v5962_v29, %v919_v25 }
 0x34e   : > { %v6036_v37 = vsel %vm1412_vm1, %v1443_v8, %v1445_v17  ;;  %v6039_v11 = vsel %vm1412_vm1, %v1445_v17, %v1447_v50  ;;  %1212 = vrot.lane.b32.xlu1 %v958_v5, %s5461_s10  ;;  %v1063_v50 = vcombine.low %v5972_v56, %v6017_v7  ;;  %v1064_v8 = vcombine.high %v5972_v56, %v6017_v7 }
 0x34f   : > { %1204 = vrot.lane.b32.xlu0 %v951_v61, %s5462_s28  ;;  %v6053_v43 = vsel %vm1962_vm2, %v1993_v46, %v1995_v54  ;;  %v6056_v0 = vsel %vm1962_vm2, %v1995_v54, %v1997_v12  ;;  %v961_v17 = vcombine.high %v951_v61, %v7636_v16  ;;  %v928_v46 = vcombine.high %v5962_v29, %v919_v25 }
 0x350   : > { %v7637_v12 = vcombine.low %v5790_v51, %v5870_v32  ;;  %v7638_v61 = vcombine.high %v5790_v51, %v5870_v32  ;;  %v1080_v25 = vcombine.high %v5978_v42, %v6025_v23  ;;  %v1079_v51 = vcombine.low %v5978_v42, %v6025_v23 }
 0x351   : > { %v942_v29 = vrot.slane %v928_v46, %v5946_v15  ;;  %v1486_v42 = vcombine.high %v5851_v19, %v5992_v13  ;;  %v6111_v23 = vrot.slane %v1063_v50, %v5946_v15  ;;  %v962_v56 = vcombine.high %v958_v5, %v7636_v16 }
 0x352   : > { %v6073_v54 = vrot.slane %v7637_v12, %v5933_v45  ;;  %v6079_v6 = vrot.slane %v7638_v61, %v5933_v45  ;;  %v6088_v12 = vrot.slane %v927_v24, %v5946_v15  ;;  %v7640_v61 = vcombine.high %v5799_v57, %v5899_v48 }
 0x353   : > { %1208 = vrot.lane.b32.xlu0 %v961_v17, %s5463_s12  ;;  %1196 = vrot.lane.b32.xlu1 %v942_v29, %s5464_s13  ;;  %v960_v7 = vcombine.high %v942_v29, %v7636_v16  ;;  %v6120_v29 = vrot.slane %v1486_v42, %v5933_v45  ;;  %v7642_v24 = vcombine.high %v5802_v58, %v5902_v49  ;;  %vm7614_vm1 = vcmask 883712  }
 0x354   : > { %7639 = vst [vmem:[#allocation18_spill] sm:$0xff] %v6088_v12  ;;  %v959_v46 = vcombine.high %v6088_v12, %v7636_v16  ;;  %v6117_v47 = vrot.slane %v7640_v61, %v5933_v45  ;;  %v2036_v42 = vcombine.high %v5857_v21, %v5998_v14  ;;  %v1538_v12 = vcombine.high %v5813_v1, %v5919_v18 }
 0x355   : > { %v6135_v61 = vrot.slane %v7642_v24, %v5933_v45  ;;  %v2103_v24 = vcombine.low %v5860_v22, %v6001_v53  ;;  %v1554_v5 = vcombine.high %v5854_v20, %v5995_v41  ;;  %v1485_v28 = vcombine.low %v5851_v19, %v5992_v13 }
 0x356   : > { %v6151_v32 = vrot.slane %v2036_v42, %v5933_v45  ;;  %v7644_v19 = vcombine.high %v5866_v26, %v5984_v38  ;;  %vm1334_vm2 = vcmask 408576  }
 0x357   : > { %1192 = vrot.lane.b32.xlu0 %v959_v46, %s5465_s30  ;;  %1200 = vrot.lane.b32.xlu1 %v960_v7, %s5466_s11  ;;  %v1553_v46 = vcombine.low %v5854_v20, %v5995_v41  ;;  %v7641_v7 = vcombine.low %v5813_v1, %v5919_v18  ;;  %v6173_v20 = vrot.slane %v2103_v24, %v5933_v45 }
 0x358   : > { %v6176_v18 = vrot.slane %v1080_v25, %v5946_v15  ;;  %v6181_v41 = vrot.slane %v1538_v12, %v5933_v45  ;;  %v6213_v13 = vrot.slane %v7644_v19, %v5933_v45  ;;  %v2104_v19 = vcombine.high %v5860_v22, %v6001_v53 }
 0x359   : > { %v6129_v50 = vrot.slane %v7641_v7, %v5933_v45  ;;  %v6144_v17 = vrot.slane %v1553_v46, %v5933_v45  ;;  %v2087_v7 = vcombine.low %v5819_v3, %v5925_v30  ;;  %v6161_v46 = vrot.slane %v1064_v8, %v5946_v15 }
 0x35a   : > { %v6184_v8 = vrot.slane %v1554_v5, %v5933_v45  ;;  %v7645_v5 = vcombine.low %v5804_v59, %v5904_v52  ;;  %v6267_v22 = vrot.slane %v2104_v19, %v5933_v45  ;;  %v1756_v19 = vrot.slane %v6008_v31, %v5933_v45 }
 0x35b   : > { %1252 = vrot.lane.b32.xlu0 %v6111_v23, %s7610_s17  ;;  %1216 = vrot.lane.b32.xlu1 %v962_v56, %s5468_s7  ;;  %v1569_v63 = vcombine.low %v6129_v50, %v6144_v17  ;;  %v1570_v42 = vcombine.high %v6129_v50, %v6144_v17  ;;  %v6170_v1 = vrot.slane %v2087_v7, %v5933_v45  ;;  %v7666_v17 = vld [vmem:[#allocation14_spill] sm:$0xff]  ;;  %s5483_s17 = smov 58  }
 0x35c   : > { %v1469_v56 = vcombine.low %v5799_v57, %v5899_v48  ;;  %v7643_v7 = vcombine.low %v5866_v26, %v5984_v38  ;;  %v1087_v57 = vrot.slane %v1079_v51, %v5946_v15  ;;  %v6219_v51 = vrot.slane %v1485_v28, %v5933_v45 }
 0x35d   : > { %v2119_v25 = vcombine.low %v6170_v1, %v6173_v20  ;;  %v2019_v48 = vcombine.low %v5802_v58, %v5902_v49  ;;  %v7646_v26 = vcombine.high %v5804_v59, %v5904_v52  ;;  %v7647_v28 = vcombine.high %v6079_v6, %v6033_v44 }
 0x35e   : > { %v6192_v24 = vrot.slane %v7643_v7, %v5933_v45  ;;  %v6216_v12 = vrot.slane %v1469_v56, %v5933_v45  ;;  %v6227_v7 = vrot.slane %v7645_v5, %v5933_v45  ;;  %v2035_v49 = vcombine.low %v5857_v21, %v5998_v14 }
 0x35f   : > { %1260 = vrot.lane.b32.xlu0 %v6161_v46, %s7600_s6  ;;  %1276 = vrot.lane.b32.xlu1 %v6176_v18, %s7602_s8  ;;  %v6233_v38 = vrot.slane %v7646_v26, %v5933_v45  ;;  %v1026_v58 = vrot.slane %v7647_v28, %v5946_v15  ;;  %v7648_v56 = vcombine.low %v6073_v54, %v6028_v39  ;;  %s5478_s6 = smov 126   ;;  %s7604_s8 = smov 66  }
 0x360   : > { %v1502_v59 = vcombine.high %v6216_v12, %v6219_v51  ;;  %v2088_v52 = vcombine.high %v5819_v3, %v5925_v30  ;;  %v6254_v26 = vrot.slane %v2019_v48, %v5933_v45  ;;  %v6257_v21 = vrot.slane %v2035_v49, %v5933_v45 }
 0x361   : > { %v1003_v5 = vrot.slane %v7648_v56, %v5946_v15  ;;  %v1097_v53 = vcombine.high %v1087_v57, %v7636_v16  ;;  %v1501_v28 = vcombine.low %v6216_v12, %v6219_v51  ;;  %v1748_v14 = vrot.slane %v5941_v40, %v5933_v45 }
 0x362   : > { %v6264_v3 = vrot.slane %v2088_v52, %v5933_v45  ;;  %v2052_v48 = vcombine.high %v6254_v26, %v6257_v21  ;;  %v1030_v40 = vcombine.high %v1026_v58, %v7636_v16  ;;  %v2298_v50 = vrot.slane %v7666_v17, %v5933_v45 }
 0x363   : > { %1268 = vrot.lane.b32.xlu0 %v1087_v57, %s7596_s9  ;;  %1244 = vrot.lane.b32.xlu1 %v1026_v58, %s5472_s24  ;;  %v7649_v57 = vcombine.high %v6073_v54, %v6028_v39  ;;  %v1027_v31 = vcombine.high %v1003_v5, %v7636_v16  ;;  %s5476_s9 = smov 50   ;;  %v7650_v39 = vcombine.low %v6079_v6, %v6033_v44 }
 0x364   : > { %v2135_v49 = vcombine.low %v6264_v3, %v6267_v22  ;;  %v2136_v56 = vcombine.high %v6264_v3, %v6267_v22  ;;  %v7651_v44 = vcombine.low %v5873_v33, %v6036_v37  ;;  %v1096_v58 = vcombine.high %v6161_v46, %v7636_v16 }
 0x365   : > { %v6288_v30 = vrot.slane %v7649_v57, %v5946_v15  ;;  %v6302_v54 = vrot.slane %v7650_v39, %v5946_v15  ;;  %v6306_v57 = vcombine.low %v1748_v14, %v1756_v19  ;;  %v1095_v14 = vcombine.high %v6111_v23, %v7636_v16 }
 0x366   : > { %v6317_v6 = vrot.slane %v7651_v44, %v5933_v45  ;;  %v7652_v19 = vcombine.low %v5881_v35, %v6053_v43  ;;  %v7653_v44 = vcombine.low %v6117_v47, %v6120_v29  ;;  %v1606_v46 = vcombine.high %v5816_v2, %v5922_v27 }
 0x367   : > { %1220 = vrot.lane.b32.xlu0 %v1003_v5, %s5473_s26  ;;  %1272 = vrot.lane.b32.xlu1 %v1097_v53, %s7598_s15  ;;  %s5477_s15 = smov 24   ;;  %v1605_v5 = vcombine.low %v5816_v2, %v5922_v27  ;;  %v2156_v27 = vcombine.high %v5822_v4, %v5928_v62  ;;  %v7667_v17 = vcombine.high %v6117_v47, %v6120_v29 }
 0x368   : > { %v6330_v39 = vrot.slane %v7652_v19, %v5933_v45  ;;  %v6336_v53 = vrot.slane %v7653_v44, %v5946_v15  ;;  %v7654_v19 = vcombine.high %v5873_v33, %v6036_v37  ;;  %v7658_v33 = vcombine.high %v5878_v34, %v6039_v11 }
 0x369   : > { %v7669_v47 = vcombine.high %v6135_v61, %v6151_v32  ;;  %v7674_v22 = vcombine.low %v6233_v38, %v6213_v13 }
 0x36a   : > { %v6351_v52 = vrot.slane %v7654_v19, %v5933_v45  ;;  %v6374_v19 = vrot.slane %v1606_v46, %v5933_v45 }
 0x36b   : > { %1228 = vrot.lane.b32.xlu0 %v6288_v30, %s5475_s16  ;;  %1224 = vrot.lane.b32.xlu1 %v1027_v31, %s5476_s9  ;;  %v2155_v31 = vcombine.low %v5822_v4, %v5928_v62  ;;  %v6383_v62 = vrot.slane %v2156_v27, %v5933_v45  ;;  %v6404_v27 = vrot.slane %v1569_v63, %v5946_v15 }
 0x36c   : > { %v1654_v46 = vcombine.high %v6374_v19, %v6351_v52  ;;  %v1098_v63 = vcombine.high %v6176_v18, %v7636_v16  ;;  %v1584_v18 = vrot.slane %v1570_v42, %v5946_v15  ;;  %v1029_v42 = vcombine.high %v6302_v54, %v7636_v16 }
 0x36d   : > { %v6342_v23 = vrot.slane %v2155_v31, %v5933_v45  ;;  %v7656_v31 = vcombine.low %v5878_v34, %v6039_v11  ;;  %v7659_v34 = vcombine.low %v5886_v36, %v6056_v0  ;;  %v2082_v29 = vrot.slane %v7669_v47, %v5946_v15 }
 0x36e   : > { %v1602_v12 = vcombine.high %v1584_v18, %v7636_v16 }
 0x36f   : > { %1236 = vrot.lane.b32.xlu0 %v6302_v54, %s5477_s15  ;;  %1248 = vrot.lane.b32.xlu1 %v1030_v40, %s5478_s6  ;;  %v6339_v40 = vrot.slane %v1605_v5, %v5933_v45  ;;  %v7655_v5 = vcombine.low %v5833_v9, %v5937_v55  ;;  %v6363_v2 = vrot.slane %v7656_v31, %v5933_v45 }
 0x370   : > { %v2187_v37 = vcombine.low %v6342_v23, %v6330_v39  ;;  %v7657_v31 = vcombine.high %v5881_v35, %v6053_v43  ;;  %v1653_v35 = vcombine.low %v6374_v19, %v6351_v52  ;;  %v6414_v11 = vrot.slane %v7659_v34, %v5933_v45 }
 0x371   : > { %v6357_v44 = vrot.slane %v7655_v5, %v5933_v45  ;;  %v6397_v5 = vrot.slane %v7658_v33, %v5933_v45  ;;  %v7662_v34 = vcombine.high %v5886_v36, %v6056_v0  ;;  %v7663_v36 = vcombine.high %v5838_v10, %v5955_v60 }
 0x372   : > { %v7668_v54 = vcombine.low %v6181_v41, %v6184_v8  ;;  %v7686_v52 = vcombine.high %v6342_v23, %v6330_v39 }
 0x373   : > { %1256 = vrot.lane.b32.xlu0 %v1095_v14, %s7604_s8  ;;  %1778 = vrot.lane.b32.xlu1 %v6336_v53, %s5462_s28  ;;  %v6389_v14 = vrot.slane %v7657_v31, %v5933_v45  ;;  %s7606_s8 = smov 6   ;;  %v7661_v31 = vcombine.low %v5838_v10, %v5955_v60  ;;  %v6436_v43 = vrot.slane %v7662_v34, %v5933_v45  ;;  %v7664_v60 = vld [vmem:[#allocation17_spill] sm:$0xff] }
 0x374   : > { %v6453_v0 = vrot.slane %v7663_v36, %v5933_v45  ;;  %v2306_v34 = vrot.slane %v7664_v60, %v5933_v45  ;;  %v6676_v19 = vrot.slane %v7686_v52, %v5946_v15 }
 0x375   : > { %v6430_v4 = vrot.slane %v7661_v31, %v5933_v45 }
 0x376   : > { %v2271_v10 = vcombine.low %v6453_v0, %v6436_v43  ;;  %v6485_v60 = vcombine.low %v2298_v50, %v2306_v34  ;;  %v7670_v50 = vcombine.high %v6170_v1, %v6173_v20  ;;  %v2150_v1 = vrot.slane %v2136_v56, %v5946_v15 }
 0x377   : > { %1264 = vrot.lane.b32.xlu0 %v1096_v58, %s7606_s8  ;;  %v7660_v58 = vcombine.high %v5833_v9, %v5937_v55  ;;  %1794 = vrot.lane.b32.xlu1 %v6404_v27, %s5473_s26  ;;  %v2203_v9 = vcombine.low %v6383_v62, %v6389_v14  ;;  %v1706_v55 = vcombine.high %v6357_v44, %v6363_v2  ;;  %s7608_s8 = smov 14  }
 0x378   : > { %v2255_v31 = vcombine.low %v6430_v4, %v6414_v11  ;;  %v2134_v34 = vrot.slane %v7670_v50, %v5946_v15  ;;  %v7672_v20 = vcombine.low %v6227_v7, %v6192_v24  ;;  %v1535_v56 = vcombine.high %v6336_v53, %v7636_v16 }
 0x379   : > { %v6420_v33 = vrot.slane %v7660_v58, %v5933_v45  ;;  %v2211_v39 = vrot.slane %v2203_v9, %v5946_v15 }
 0x37b   : > { %1280 = vrot.lane.b32.xlu0 %v1098_v63, %s7608_s8  ;;  %v1721_v58 = vcombine.low %v6420_v33, %v6397_v5  ;;  %1802 = vrot.lane.b32.xlu1 %v1584_v18, %s5475_s16  ;;  %v1028_v63 = vcombine.high %v6288_v30, %v7636_v16  ;;  %s5482_s8 = smov 118   ;;  %v7665_v30 = vcombine.low %v6135_v61, %v6151_v32 }
 0x37c   : > { %v2066_v32 = vrot.slane %v2052_v48, %v5946_v15  ;;  %v2143_v61 = vrot.slane %v2135_v49, %v5946_v15  ;;  %v1155_v49 = vrot.slane %v7674_v22, %v5946_v15  ;;  %v2086_v18 = vcombine.high %v2082_v29, %v7636_v16 }
 0x37d   : > { %v2075_v36 = vrot.slane %v7665_v30, %v5946_v15  ;;  %v1532_v30 = vrot.slane %v7667_v17, %v5946_v15 }
 0x37f   : > { %1232 = vrot.lane.b32.xlu0 %v1028_v63, %s5482_s8  ;;  %2328 = vrot.lane.b32.xlu1 %v2075_v36, %s5462_s28  ;;  %v2127_v63 = vrot.slane %v2119_v25, %v5946_v15  ;;  %v1516_v25 = vrot.slane %v1502_v59, %v5946_v15  ;;  %v7671_v59 = vcombine.high %v6181_v41, %v6184_v8 }
 0x380   : > { %v1139_v41 = vrot.slane %v7672_v20, %v5946_v15  ;;  %v7673_v8 = vcombine.high %v6227_v7, %v6192_v24  ;;  %v1536_v3 = vcombine.high %v1532_v30, %v7636_v16  ;;  %v6556_v24 = vrot.slane %v1501_v28, %v5946_v15 }
 0x381   : > { %v1600_v17 = vrot.slane %v7671_v59, %v5946_v15  ;;  %v7675_v7 = vcombine.high %v6233_v38, %v6213_v13  ;;  %v1534_v53 = vcombine.high %v1516_v25, %v7636_v16  ;;  %v1601_v13 = vcombine.high %v6404_v27, %v7636_v16 }
 0x382   : > { %v1146_v48 = vrot.slane %v7673_v8, %v5946_v15  ;;  %v2151_v51 = vcombine.high %v2127_v63, %v7636_v16  ;;  %v2084_v38 = vcombine.high %v2066_v32, %v7636_v16  ;;  %v2152_v27 = vcombine.high %v2134_v34, %v7636_v16 }
 0x383   : > { %1240 = vrot.lane.b32.xlu0 %v1029_v42, %s5483_s17  ;;  %2344 = vrot.lane.b32.xlu1 %v2127_v63, %s5473_s26  ;;  %v1593_v42 = vrot.slane %v7668_v54, %v5946_v15  ;;  %s5487_s26 = smov 124   ;;  %v1533_v54 = vcombine.high %v6556_v24, %v7636_v16  ;;  %v2085_v63 = vcombine.high %v2075_v36, %v7636_v16 }
 0x384   : > { %v1764_v36 = vrot.slane %v6306_v57, %v5946_v15  ;;  %v2153_v59 = vcombine.high %v2143_v61, %v7636_v16  ;;  %v1165_v57 = vcombine.high %v1155_v49, %v7636_v16  ;;  %v6616_v8 = vrot.slane %v2187_v37, %v5946_v15 }
 0x385   : > { %v1603_v28 = vcombine.high %v1593_v42, %v7636_v16 }
 0x387   : > { %1786 = vrot.lane.b32.xlu0 %v1532_v30, %s5461_s10  ;;  %1810 = vrot.lane.b32.xlu1 %v1593_v42, %s5477_s15  ;;  %v1162_v30 = vrot.slane %v7675_v7, %v5946_v15  ;;  %v2154_v42 = vcombine.high %v2150_v1, %v7636_v16 }
 0x389   : > { %v1166_v20 = vcombine.high %v1162_v30, %v7636_v16 }
 0x38b   : > { %1770 = vrot.lane.b32.xlu0 %v1516_v25, %s5464_s13  ;;  %2336 = vrot.lane.b32.xlu1 %v2082_v29, %s5461_s10  ;;  %s5484_s10 = smov 48   ;;  %v7676_v25 = vcombine.low %v6254_v26, %v6257_v21  ;;  %v1604_v26 = vcombine.high %v1600_v17, %v7636_v16  ;;  %v1164_v21 = vcombine.high %v1146_v48, %v7636_v16 }
 0x38d   : > { %v6589_v47 = vrot.slane %v7676_v25, %v5946_v15  ;;  %v7685_v25 = vcombine.high %v6383_v62, %v6389_v14  ;;  %v7687_v62 = vcombine.high %v6430_v4, %v6414_v11  ;;  %v6735_v11 = vrot.slane %v2271_v10, %v5946_v15 }
 0x38f   : > { %2352 = vrot.lane.b32.xlu0 %v2134_v34, %s5475_s16  ;;  %1818 = vrot.lane.b32.xlu1 %v1600_v17, %s5472_s24  ;;  %v2083_v29 = vcombine.high %v6589_v47, %v7636_v16  ;;  %v1163_v17 = vcombine.high %v1139_v41, %v7636_v16  ;;  %s7684_s16 = smov 40   ;;  %v6715_v9 = vrot.slane %v7687_v62, %v5946_v15 }
 0x393   : > { %2320 = vrot.lane.b32.xlu0 %v2066_v32, %s5464_s13  ;;  %2360 = vrot.lane.b32.xlu1 %v2143_v61, %s5477_s15  ;;  %s5485_s13 = smov 116   ;;  %s7682_s15 = smov 100  }
 0x397   : > { %2368 = vrot.lane.b32.xlu0 %v2150_v1, %s5472_s24  ;;  %1284 = vrot.lane.b32.xlu1 %v1139_v41, %s5484_s10  ;;  %s5486_s24 = smov 56   ;;  %v7677_v41 = vld [vmem:[#allocation18_spill] sm:$0xff] }
 0x39b   : > { %1292 = vrot.lane.b32.xlu0 %v1146_v48, %s5485_s13  ;;  %1790 = vrot.lane.b32.xlu1 %v1536_v3, %s5468_s7 }
 0x39f   : > { %1300 = vrot.lane.b32.xlu0 %v1155_v49, %s5486_s24  ;;  %1782 = vrot.lane.b32.xlu1 %v1535_v56, %s5463_s12  ;;  %v7678_v49 = vcombine.low %v6339_v40, %v6317_v6 }
 0x3a1   : > { %v1645_v56 = vrot.slane %v7678_v49, %v5946_v15 }
 0x3a3   : > { %1308 = vrot.lane.b32.xlu0 %v1162_v30, %s5487_s26  ;;  %1766 = vrot.lane.b32.xlu1 %v1533_v54, %s5465_s30  ;;  %v1669_v10 = vcombine.high %v1645_v56, %v7636_v16 }
 0x3a7   : > { %1774 = vrot.lane.b32.xlu0 %v1534_v53, %s5466_s11  ;;  %1806 = vrot.lane.b32.xlu1 %v1602_v12, %s5482_s8  ;;  %v6635_v53 = vrot.slane %v1654_v46, %v5946_v15 }
 0x3a9   : > { %v1672_v49 = vcombine.high %v6635_v53, %v7636_v16 }
 0x3ab   : > { %1798 = vrot.lane.b32.xlu0 %v1601_v13, %s5476_s9  ;;  %2348 = vrot.lane.b32.xlu1 %v2151_v51, %s5476_s9  ;;  %v7680_v51 = vcombine.high %v6339_v40, %v6317_v6  ;;  %s7681_s9 = smov 108   ;;  %v6659_v6 = vrot.slane %v1653_v35, %v5946_v15 }
 0x3af   : > { %2324 = vrot.lane.b32.xlu0 %v2084_v38, %s5466_s11  ;;  %1814 = vrot.lane.b32.xlu1 %v1603_v28, %s5483_s17  ;;  %s5488_s11 = smov 64   ;;  %v1652_v38 = vrot.slane %v7680_v51, %v5946_v15 }
 0x3b3   : > { %2340 = vrot.lane.b32.xlu0 %v2086_v18, %s5468_s7  ;;  %2356 = vrot.lane.b32.xlu1 %v2152_v27, %s5482_s8  ;;  %s5491_s7 = smov 82   ;;  %s5492_s8 = smov 30   ;;  %v7683_v18 = vcombine.low %v6357_v44, %v6363_v2  ;;  %v6705_v2 = vrot.slane %v1721_v58, %v5946_v15  ;;  %v7688_v58 = vcombine.high %v6420_v33, %v6397_v5 }
 0x3b5   : > { %v1713_v27 = vrot.slane %v7683_v18, %v5946_v15 }
 0x3b7   : > { %2332 = vrot.lane.b32.xlu0 %v2085_v63, %s5463_s12  ;;  %2372 = vrot.lane.b32.xlu1 %v2154_v42, %s5478_s6  ;;  %s5489_s12 = smov 22   ;;  %v6668_v42 = vrot.slane %v7685_v25, %v5946_v15 }
 0x3bb   : > { %2316 = vrot.lane.b32.xlu0 %v2083_v29, %s5465_s30  ;;  %1890 = vrot.lane.b32.xlu1 %v1764_v36, %s5488_s11  ;;  %s5490_s30 = smov 90   ;;  %v6686_v36 = vrot.slane %v1706_v55, %v5946_v15 }
 0x3bf   : > { %1822 = vrot.lane.b32.xlu0 %v1604_v26, %s5478_s6  ;;  %1296 = vrot.lane.b32.xlu1 %v1164_v21, %s5489_s12  ;;  %v6699_v21 = vrot.slane %v2255_v31, %v5946_v15  ;;  %v6723_v31 = vrot.slane %v7688_v58, %v5946_v15 }
 0x3c0   : > { %v1213_v34 = vpop.permute.xlu1 %1212 }
 0x3c1   : > { %v1205_v50 = vpop.permute.xlu0 %1204  ;;  %v1740_v25 = vcombine.high %v6723_v31, %v7636_v16 }
 0x3c3   : > { %2364 = vrot.lane.b32.xlu0 %v2153_v59, %s5483_s17  ;;  %1304 = vrot.lane.b32.xlu1 %v1165_v57, %s5490_s30  ;;  %s7679_s17 = smov 32   ;;  %v7689_v59 = vcombine.high %v6453_v0, %v6436_v43  ;;  %v1670_v43 = vcombine.high %v1652_v38, %v7636_v16 }
 0x3c5   : > { %v1209_v32 = vpop.permute.xlu0 %1208  ;;  %v1197_v1 = vpop.permute.xlu1 %1196  ;;  %v6745_v57 = vrot.slane %v7689_v59, %v5946_v15 }
 0x3c7   : > { %1288 = vrot.lane.b32.xlu0 %v1163_v17, %s5491_s7  ;;  %1312 = vrot.lane.b32.xlu1 %v1166_v20, %s5492_s8 }
 0x3c9   : > { %v1193_v61 = vpop.permute.xlu0 %1192  ;;  %v1201_v3 = vpop.permute.xlu1 %1200 }
 0x3ca   : > { %v1320_v48 = vsel %vm1319_vm3, %v7677_v41, %v1193_v61  ;;  %v1326_v37 = vsel %vm1325_vm5, %v1201_v3, %v1205_v50  ;;  %v1737_v61 = vcombine.high %v1713_v27, %v7636_v16 }
 0x3cb   : > { %v1322_v22 = vsel %vm1321_vm4, %v1320_v48, %v1197_v1  ;;  %2376 = vrot.lane.b32.xlu0 %v6616_v8, %s7679_s17  ;;  %1826 = vrot.lane.b32.xlu1 %v1645_v56, %s7679_s17  ;;  %v1328_v30 = vsel %vm1327_vm7, %v1326_v37, %v1209_v32  ;;  %s5502_s17 = smov 120  }
 0x3cc   : > { %v1324_v7 = vsel %vm1323_vm6, %v1322_v22, %v1201_v3  ;;  %v1330_v12 = vsel %vm1329_vm8, %v1328_v30, %v1213_v34  ;;  %v2221_v30 = vcombine.high %v2211_v39, %v7636_v16 }
 0x3cd   : > { %v1253_v54 = vpop.permute.xlu0 %1252  ;;  %1382 = vst [vmem:[#allocation2] sm:$0xf] %v1324_v7  ;;  %v6638_v13 = vpop.permute.xlu1 %1216 }
 0x3ce   : > { %v1332_v28 = vsel %vm1331_vm9, %v1330_v12, %v6638_v13  ;;  %v2219_v12 = vcombine.high %v6616_v8, %v7636_v16  ;;  %v1671_v8 = vcombine.high %v6659_v6, %v7636_v16 }
 0x3cf   : > { %1850 = vrot.lane.b32.xlu0 %v6635_v53, %s7681_s9  ;;  %1383 = vst [vmem:[#allocation2 + $0x8] sm:$0xf] %v1332_v28  ;;  %1834 = vrot.lane.b32.xlu1 %v1652_v38, %s7682_s15  ;;  %v1739_v38 = vcombine.high %v6705_v2, %v7636_v16 }
 0x3d1   : > { %v1261_v46 = vpop.permute.xlu0 %1260  ;;  %v6653_v63 = vpop.permute.xlu1 %1276 }
 0x3d3   : > { %1858 = vrot.lane.b32.xlu0 %v1713_v27, %s5484_s10  ;;  %1842 = vrot.lane.b32.xlu1 %v6659_v6, %s7684_s16  ;;  %v2220_v6 = vcombine.high %v6676_v19, %v7636_v16 }
 0x3d5   : > { %v1269_v40 = vpop.permute.xlu0 %1268  ;;  %v6670_v29 = vpop.permute.xlu1 %1244 }
 0x3d7   : > { %2400 = vrot.lane.b32.xlu0 %v6668_v42, %s7681_s9  ;;  %2384 = vrot.lane.b32.xlu1 %v6676_v19, %s7682_s15  ;;  %s5503_s9 = smov 86   ;;  %s5504_s15 = smov 52  }
 0x3d9   : > { %v1221_v35 = vpop.permute.xlu0 %1220  ;;  %v1273_v26 = vpop.permute.xlu1 %1272 }
 0x3da   : > { %v1333_v41 = vsel %vm410_vm0, %v6638_v13, %v1221_v35  ;;  %v2289_v35 = vcombine.high %v6735_v11, %v7636_v16 }
 0x3db   : > { %1866 = vrot.lane.b32.xlu0 %v6686_v36, %s5485_s13  ;;  %2392 = vrot.lane.b32.xlu1 %v2211_v39, %s7684_s16  ;;  %s5505_s16 = smov 18  }
 0x3dd   : > { %v1229_v23 = vpop.permute.xlu0 %1228  ;;  %v1225_v44 = vpop.permute.xlu1 %1224 }
 0x3de   : > { %v1335_v22 = vsel %vm1334_vm2, %v1333_v41, %v1225_v44 }
 0x3df   : > { %2408 = vrot.lane.b32.xlu0 %v6699_v21, %s5484_s10  ;;  %1874 = vrot.lane.b32.xlu1 %v6705_v2, %s5486_s24  ;;  %s7690_s10 = smov 66   ;;  %v1738_v2 = vcombine.high %v6686_v36, %v7636_v16 }
 0x3e1   : > { %v1237_v14 = vpop.permute.xlu0 %1236  ;;  %v6717_v55 = vpop.permute.xlu1 %1248 }
 0x3e2   : > { %v1349_v50 = vsel %vm7618_vm10, %v6717_v55, %v1253_v54 }
 0x3e3   : > { %2416 = vrot.lane.b32.xlu0 %v6715_v9, %s5485_s13  ;;  %1882 = vrot.lane.b32.xlu1 %v6723_v31, %s5487_s26  ;;  %s7691_s13 = smov 6   ;;  %v2288_v31 = vcombine.high %v6715_v9, %v7636_v16 }
 0x3e5   : > { %v1257_v4 = vpop.permute.xlu0 %1256  ;;  %v6739_v34 = vpop.permute.xlu1 %1778 }
 0x3e6   : > { %v1351_v5 = vsel %vm7617_vm11, %v1349_v50, %v1257_v4  ;;  %vm1346_vm11 = vcmask 1031168   ;;  %v7694_v4 = vld [vmem:[#allocation15_spill] sm:$0xff] }
 0x3e7   : > { %v1353_v33 = vsel %vm7616_vm12, %v1351_v5, %v1261_v46  ;;  %2424 = vrot.lane.b32.xlu0 %v6735_v11, %s5486_s24  ;;  %2432 = vrot.lane.b32.xlu1 %v6745_v57, %s5487_s26  ;;  %s7692_s24 = smov 14   ;;  %s7693_s26 = smov 74   ;;  %vm1344_vm12 = vcmask 752640   ;;  %v7695_v11 = vld [vmem:[#allocation16_spill] sm:$0xff] }
 0x3e8   : > { %1386 = vst [vmem:[#allocation2 + $0x20] sm:$0xf] %v1353_v33 }
 0x3e9   : > { %v1265_v32 = vpop.permute.xlu0 %1264  ;;  %v6755_v1 = vpop.permute.xlu1 %1794 }
 0x3ea   : > { %v1355_v17 = vsel %vm7612_vm13, %v1261_v46, %v1265_v32  ;;  %vm1336_vm13 = vcmask 687104  }
 0x3eb   : > { %v1357_v0 = vsel %vm7615_vm14, %v1355_v17, %v1269_v40  ;;  %1830 = vrot.lane.b32.xlu0 %v1669_v10, %s7690_s10  ;;  %1838 = vrot.lane.b32.xlu1 %v1670_v43, %s7691_s13  ;;  %v1337_v37 = vsel %vm1336_vm13, %v1335_v22, %v1229_v23  ;;  %vm1342_vm14 = vcmask 474112   ;;  %v2290_v23 = vcombine.high %v6745_v57, %v7636_v16 }
 0x3ec   : > { %v1359_v20 = vsel %vm7613_vm15, %v1357_v0, %v1273_v26  ;;  %vm1338_vm15 = vcmask 965632   ;;  %v2222_v26 = vcombine.high %v6668_v42, %v7636_v16 }
 0x3ed   : > { %v6763_v48 = vpop.permute.xlu0 %1280  ;;  %v1361_v3 = vsel %vm7614_vm1, %v1359_v20, %v6653_v63  ;;  %v6770_v56 = vpop.permute.xlu1 %1802  ;;  %vm1340_vm1 = vcmask 195584  }
 0x3ee   : > { %1387 = vst [vmem:[#allocation2 + $0x28] sm:$0xf] %v1361_v3 }
 0x3ef   : > { %1862 = vrot.lane.b32.xlu0 %v1737_v61, %s5491_s7  ;;  %1854 = vrot.lane.b32.xlu1 %v1672_v49, %s7692_s24 }
 0x3f1   : > { %v1233_v7 = vpop.permute.xlu0 %1232  ;;  %v6779_v53 = vpop.permute.xlu1 %2328 }
 0x3f2   : > { %v1339_v54 = vsel %vm1338_vm15, %v1337_v37, %v1233_v7  ;;  %v1341_v13 = vsel %vm1340_vm1, %v1233_v7, %v1237_v14  ;;  %v2314_v14 = vrot.slane %v6485_v60, %v5946_v15 }
 0x3f3   : > { %1384 = vst [vmem:[#allocation2 + $0x10] sm:$0xf] %v1339_v54  ;;  %2396 = vrot.lane.b32.xlu0 %v2221_v30, %s7693_s26  ;;  %2380 = vrot.lane.b32.xlu1 %v2219_v12, %s7690_s10  ;;  %s5506_s10 = smov 112  }
 0x3f5   : > { %v1241_v51 = vpop.permute.xlu0 %1240  ;;  %v6791_v18 = vpop.permute.xlu1 %2344 }
 0x3f6   : > { %v1343_v28 = vsel %vm1342_vm14, %v1341_v13, %v1241_v51 }
 0x3f7   : > { %v1345_v46 = vsel %vm1344_vm12, %v1343_v28, %v6670_v29  ;;  %1878 = vrot.lane.b32.xlu0 %v1739_v38, %s5490_s30  ;;  %1846 = vrot.lane.b32.xlu1 %v1671_v8, %s7693_s26  ;;  %s5509_s26 = smov 10  }
 0x3f8   : > { %v1347_v27 = vsel %vm1346_vm11, %v1345_v46, %v6717_v55  ;;  %v2287_v55 = vcombine.high %v6699_v21, %v7636_v16  ;;  %v7696_v21 = vcombine.low %v7694_v4, %v7695_v11 }
 0x3f9   : > { %1385 = vst [vmem:[#allocation2 + $0x18] sm:$0xf] %v1347_v27  ;;  %v1787_v40 = vpop.permute.xlu0 %1786  ;;  %v6801_v52 = vpop.permute.xlu1 %1810 }
 0x3fa   : > { %v1190_v5 = vrot.slane %v7696_v21, %v5946_v15 }
 0x3fb   : > { %1886 = vrot.lane.b32.xlu0 %v1740_v25, %s5492_s8  ;;  %2388 = vrot.lane.b32.xlu1 %v2220_v6, %s7691_s13  ;;  %s5507_s13 = smov 44  }
 0x3fd   : > { %v1771_v29 = vpop.permute.xlu0 %1770  ;;  %v6809_v39 = vpop.permute.xlu1 %2336 }
 0x3ff   : > { %2428 = vrot.lane.b32.xlu0 %v2289_v35, %s5490_s30  ;;  %2404 = vrot.lane.b32.xlu1 %v2222_v26, %s7692_s24  ;;  %s5499_s30 = smov 60   ;;  %s5508_s24 = smov 78  }
 0x401   : > { %v2353_v19 = vpop.permute.xlu0 %2352  ;;  %v6815_v44 = vpop.permute.xlu1 %1818 }
 0x403   : > { %2436 = vrot.lane.b32.xlu0 %v2290_v23, %s5492_s8  ;;  %1870 = vrot.lane.b32.xlu1 %v1738_v2, %s5489_s12  ;;  %s5501_s8 = smov 26  }
 0x405   : > { %v6821_v42 = vpop.permute.xlu0 %2320  ;;  %v6825_v62 = vpop.permute.xlu1 %2360 }
 0x407   : > { %2440 = vrot.lane.b32.xlu0 %v2314_v14, %s5488_s11  ;;  %2412 = vrot.lane.b32.xlu1 %v2287_v55, %s5491_s7  ;;  %s5500_s7 = smov 94  }
 0x409   : > { %v6831_v58 = vpop.permute.xlu0 %2368  ;;  %v6833_v36 = vpop.permute.xlu1 %1284 }
 0x40b   : > { %2420 = vrot.lane.b32.xlu1 %v2288_v31, %s5489_s12  ;;  %s5512_s12 = smov 36  }
 0x40d   : > { %v6838_v50 = vpop.permute.xlu0 %1292  ;;  %v1791_v60 = vpop.permute.xlu1 %1790 }
 0x40e   : > { %v1900_v22 = vsel %vm410_vm0, %v1791_v60, %v6755_v1 }
 0x40f   : > { %1316 = vrot.lane.b32.xlu1 %v1190_v5, %s5488_s11  ;;  %s5493_s11 = smov 127  }
 0x411   : > { %v6845_v33 = vpop.permute.xlu0 %1300  ;;  %v1783_v59 = vpop.permute.xlu1 %1782 }
 0x415   : > { %v6847_v57 = vpop.permute.xlu0 %1308  ;;  %v1767_v10 = vpop.permute.xlu1 %1766 }
 0x416   : > { %v1893_v9 = vsel %vm1319_vm3, %v6556_v24, %v1767_v10 }
 0x417   : > { %v1894_v32 = vsel %vm1321_vm4, %v1893_v9, %v1771_v29 }
 0x419   : > { %v1775_v17 = vpop.permute.xlu0 %1774  ;;  %v1807_v41 = vpop.permute.xlu1 %1806 }
 0x41a   : > { %v1895_v43 = vsel %vm1323_vm6, %v1894_v32, %v1775_v17  ;;  %v1896_v0 = vsel %vm1325_vm5, %v1775_v17, %v6739_v34 }
 0x41b   : > { %v1897_v20 = vsel %vm1327_vm7, %v1896_v0, %v1783_v59  ;;  %v1934_v61 = vrot.slane %v1895_v43, 4 }
 0x41c   : > { %v1898_v3 = vsel %vm1329_vm8, %v1897_v20, %v1787_v40 }
 0x41d   : > { %v1899_v49 = vsel %vm1331_vm9, %v1898_v3, %v1791_v60  ;;  %1952 = vst [vmem:[#allocation2] sm:$0xf0] %v1934_v61  ;;  %v1799_v24 = vpop.permute.xlu0 %1798  ;;  %v2349_v34 = vpop.permute.xlu1 %2348 }
 0x41e   : > { %v1935_v37 = vrot.slane %v1899_v49, 4  ;;  %v1901_v7 = vsel %vm1334_vm2, %v1900_v22, %v1799_v24 }
 0x41f   : > { %v1902_v30 = vsel %vm1336_vm13, %v1901_v7, %v6770_v56 }
 0x420   : > { %1953 = vst [vmem:[#allocation2 + $0x8] sm:$0xf0] %v1935_v37  ;;  %v1903_v54 = vsel %vm1338_vm15, %v1902_v30, %v1807_v41 }
 0x421   : > { %v1936_v12 = vrot.slane %v1903_v54, 4  ;;  %v2325_v13 = vpop.permute.xlu0 %2324  ;;  %v1815_v51 = vpop.permute.xlu1 %1814 }
 0x422   : > { %v2446_v56 = vsel %vm1325_vm5, %v2325_v13, %v6779_v53  ;;  %vm1372_vm5 = vcmask 457728  }
 0x423   : > { %1954 = vst [vmem:[#allocation2 + $0x10] sm:$0xf0] %v1936_v12 }
 0x425   : > { %v2341_v38 = vpop.permute.xlu0 %2340  ;;  %v2357_v8 = vpop.permute.xlu1 %2356 }
 0x426   : > { %v2450_v1 = vsel %vm410_vm0, %v2341_v38, %v6791_v18  ;;  %vm1370_vm0 = vcmask 179200   ;;  %v2454_v59 = vsel %vm1340_vm1, %v2357_v8, %v6825_v62 }
 0x427   : > { %v2451_v28 = vsel %vm1334_vm2, %v2450_v1, %v2349_v34  ;;  %v6872_v6 = vld [vmem:[#allocation2 + $0x8] sm:$0xff]  ;;  %vm7702_vm2 = vcmask 326656  }
 0x428   : > { %v2452_v46 = vsel %vm1336_vm13, %v2451_v28, %v2353_v19  ;;  %v1904_v19 = vsel %vm1340_vm1, %v1807_v41, %v6801_v52  ;;  %vm7698_vm13 = vcmask 818176  }
 0x429   : > { %v2453_v27 = vsel %vm1338_vm15, %v2452_v46, %v2357_v8  ;;  %v2333_v40 = vpop.permute.xlu0 %2332  ;;  %v6878_v35 = vpop.permute.xlu1 %2372  ;;  %v1905_v2 = vsel %vm1342_vm14, %v1904_v19, %v1815_v51  ;;  %vm7701_vm1 = vmmov %vm7698_vm13 }
 0x42a   : > { %2477 = vst [vmem:[#allocation2 + $0x58] sm:$0xf] %v2453_v27  ;;  %v2447_v25 = vsel %vm1327_vm7, %v2446_v56, %v2333_v40  ;;  %v6874_v29 = vld [vmem:[#allocation2 + $0x10] sm:$0xff]  ;;  %v1906_v60 = vsel %vm1344_vm12, %v1905_v2, %v6815_v44  ;;  %vm1376_vm7 = vcmask 1014784  }
 0x42b   : > { %v2448_v18 = vsel %vm1329_vm8, %v2447_v25, %v6809_v39  ;;  %v6882_v26 = vpack.i.bf16 %v6874_v29, %v6872_v6  ;;  %vm1366_vm8 = vcmask 670720  }
 0x42c   : > { %v2449_v53 = vsel %vm1331_vm9, %v2448_v18, %v2341_v38  ;;  %vm1368_vm9 = vcmask 949248  }
 0x42d   : > { %2476 = vst [vmem:[#allocation2 + $0x50] sm:$0xf] %v2449_v53  ;;  %v2317_v23 = vpop.permute.xlu0 %2316  ;;  %v6892_v55 = vpop.permute.xlu1 %1890 }
 0x42e   : > { %v2443_v14 = vsel %vm1319_vm3, %v6589_v47, %v2317_v23  ;;  %vm1362_vm3 = vcmask 113664  }
 0x42f   : > { %v2444_v39 = vsel %vm1321_vm4, %v2443_v14, %v6821_v42  ;;  %vm1364_vm4 = vcmask 392192   ;;  %v1363_v43 = vsel %vm1362_vm3, %v6653_v63, %v6763_v48  ;;  %v6932_v48 = vld [vmem:[#allocation2] sm:$0xff] }
 0x430   : > { %v2445_v31 = vsel %vm1323_vm6, %v2444_v39, %v2325_v13  ;;  %vm1374_vm6 = vcmask 736256   ;;  %v1365_v61 = vsel %vm1364_vm4, %v1363_v43, %v6833_v36 }
 0x431   : > { %2475 = vst [vmem:[#allocation2 + $0x48] sm:$0xf] %v2445_v31  ;;  %v6897_v4 = vpop.permute.xlu0 %1822  ;;  %v6899_v52 = vld [vmem:[#allocation2 + $0x58] sm:$0xf]  ;;  %v1297_v21 = vpop.permute.xlu1 %1296 }
 0x432   : > { %v1907_v11 = vsel %vm1346_vm11, %v1906_v60, %v6897_v4  ;;  %v4993_v47 = vpack.c.bf16 %v6899_v52, %v6874_v29  ;;  %v1371_v5 = vsel %vm1370_vm0, %v6838_v50, %v1297_v21 }
 0x433   : > { %v1937_v42 = vrot.slane %v1907_v11, 4  ;;  %v1373_v0 = vsel %vm1372_vm5, %v1371_v5, %v6845_v33 }
 0x434   : > { %v6907_v44 = vld [vmem:[#allocation2 + $0x50] sm:$0xf] }
 0x435   : > { %1955 = vst [vmem:[#allocation2 + $0x18] sm:$0xf0] %v1937_v42  ;;  %v2365_v10 = vpop.permute.xlu0 %2364  ;;  %v6913_v9 = vpack.i.bf16 %v6899_v52, %v6907_v44  ;;  %v4984_v17 = vpack.c.bf16 %v6907_v44, %v6872_v6  ;;  %v1305_v20 = vpop.permute.xlu1 %1304 }
 0x436   : > { %v2455_v32 = vsel %vm1342_vm14, %v2454_v59, %v2365_v10  ;;  %v1375_v63 = vsel %vm1374_vm6, %v1373_v0, %v1305_v20  ;;  %vm7699_vm14 = vcmask 48128  }
 0x437   : > { %v2456_v62 = vsel %vm1344_vm12, %v2455_v32, %v6831_v58  ;;  %5203 = vrot.lane.b32.xlu0 %v6913_v9, %s5493_s11  ;;  %v1377_v33 = vsel %vm1376_vm7, %v1375_v63, %v6847_v57  ;;  %vm7697_vm12 = vcmask 539648  }
 0x438   : > { %v2457_v41 = vsel %vm1346_vm11, %v2456_v62, %v6878_v35  ;;  %v6934_v58 = vld [vmem:[#allocation2 + $0x48] sm:$0xf]  ;;  %1389 = vst [vmem:[#allocation2 + $0x38] sm:$0xf] %v1377_v33  ;;  %vm7700_vm15 = vmmov %vm7697_vm12 }
 0x439   : > { %2478 = vst [vmem:[#allocation2 + $0x60] sm:$0xf] %v2457_v41  ;;  %v1289_v3 = vpop.permute.xlu0 %1288  ;;  %v6940_v22 = vpack.i.bf16 %v6934_v58, %v6932_v48  ;;  %v4987_v36 = vpack.c.bf16 %v6934_v58, %v6932_v48  ;;  %v6945_v24 = vpop.permute.xlu1 %1312 }
 0x43a   : > { %v1367_v49 = vsel %vm1366_vm8, %v1365_v61, %v1289_v3 }
 0x43b   : > { %v1369_v37 = vsel %vm1368_vm9, %v1367_v49, %v6838_v50  ;;  %5208 = vrot.lane.b32.xlu1 %v6940_v22, %s5493_s11 }
 0x43c   : > { %1388 = vst [vmem:[#allocation2 + $0x30] sm:$0xf] %v1369_v37  ;;  %v6953_v34 = vld [vmem:[#allocation2 + $0x18] sm:$0xff] }
 0x43d   : > { %v2377_v7 = vpop.permute.xlu0 %2376  ;;  %v1827_v30 = vpop.permute.xlu1 %1826 }
 0x43e   : > { %v1908_v19 = vsel %vm7618_vm10, %v6897_v4, %v1827_v30  ;;  %v2458_v4 = vsel %vm7618_vm10, %v6878_v35, %v2377_v7  ;;  %vm7708_vm10 = vcmask 883712  }
 0x43f   : > { %5213 = vrot.lane.b32.xlu1 %v6882_v26, %s5493_s11 }
 0x440   : > { %v6955_v54 = vld [vmem:[#allocation2 + $0x60] sm:$0xf] }
 0x441   : > { %v1851_v12 = vpop.permute.xlu0 %1850  ;;  %v4990_v13 = vpack.c.bf16 %v6955_v54, %v6953_v34  ;;  %v1835_v51 = vpop.permute.xlu1 %1834 }
 0x445   : > { %v1859_v38 = vpop.permute.xlu0 %1858  ;;  %v1843_v50 = vpop.permute.xlu1 %1842 }
 0x449   : > { %v6959_v1 = vpop.permute.xlu0 %2400  ;;  %v2385_v28 = vpop.permute.xlu1 %2384 }
 0x44d   : > { %v6961_v8 = vpop.permute.xlu0 %1866  ;;  %v2393_v46 = vpop.permute.xlu1 %2392 }
 0x451   : > { %v6963_v56 = vpop.permute.xlu0 %2408  ;;  %v6965_v27 = vpop.permute.xlu1 %1874 }
 0x455   : > { %v6967_v40 = vpop.permute.xlu0 %2416  ;;  %v6969_v25 = vpop.permute.xlu1 %1882 }
 0x459   : > { %v6971_v18 = vpop.permute.xlu0 %2424  ;;  %v6973_v53 = vpop.permute.xlu1 %2432 }
 0x45d   : > { %v1831_v23 = vpop.permute.xlu0 %1830  ;;  %v1839_v14 = vpop.permute.xlu1 %1838 }
 0x45e   : > { %v1909_v2 = vsel %vm7697_vm12, %v1908_v19, %v1831_v23  ;;  %v1911_v43 = vsel %vm7699_vm14, %v1835_v51, %v1839_v14  ;;  %vm7703_vm12 = vcmask 605184   ;;  %vm1378_vm14 = vcmask 244736  }
 0x45f   : > { %v1910_v39 = vsel %vm7698_vm13, %v1909_v2, %v1835_v51  ;;  %v1912_v35 = vsel %vm7702_vm2, %v1911_v43, %v1843_v50  ;;  %vm1380_vm13 = vcmask 523264   ;;  %vm7705_vm2 = vcmask 48128  }
 0x460   : > { %v1938_v31 = vrot.slane %v1910_v39, 4 }
 0x461   : > { %v1863_v60 = vpop.permute.xlu0 %1862  ;;  %v1855_v11 = vpop.permute.xlu1 %1854 }
 0x462   : > { %1956 = vst [vmem:[#allocation2 + $0x20] sm:$0xf0] %v1938_v31  ;;  %v1915_v42 = vsel %vm1362_vm3, %v1851_v12, %v1855_v11 }
 0x463   : > { %v1916_v21 = vsel %vm1364_vm4, %v1915_v42, %v1859_v38 }
 0x464   : > { %v1917_v59 = vsel %vm1366_vm8, %v1916_v21, %v1863_v60 }
 0x465   : > { %v2397_v5 = vpop.permute.xlu0 %2396  ;;  %v1918_v10 = vsel %vm1368_vm9, %v1917_v59, %v6961_v8  ;;  %v2381_v32 = vpop.permute.xlu1 %2380 }
 0x466   : > { %v1940_v62 = vrot.slane %v1918_v10, 4  ;;  %v2459_v0 = vsel %vm7700_vm15, %v2458_v4, %v2381_v32  ;;  %vm7704_vm15 = vcmask 883712  }
 0x467   : > { %v2460_v20 = vsel %vm7701_vm1, %v2459_v0, %v2385_v28  ;;  %vm1960_vm1 = vcmask 801796  }
 0x468   : > { %1958 = vst [vmem:[#allocation2 + $0x30] sm:$0xf0] %v1940_v62  ;;  %2479 = vst [vmem:[#allocation2 + $0x68] sm:$0xf] %v2460_v20 }
 0x469   : > { %v1879_v61 = vpop.permute.xlu0 %1878  ;;  %v6989_v41 = vld [vmem:[#allocation2 + $0x20] sm:$0xff]  ;;  %v1847_v33 = vpop.permute.xlu1 %1846 }
 0x46a   : > { %v6993_v63 = vpack.i.bf16 %v6989_v41, %v6953_v34  ;;  %v1913_v3 = vsel %vm7703_vm12, %v1912_v35, %v1847_v33  ;;  %vm7706_vm12 = vcmask 326656  }
 0x46b   : > { %v1914_v49 = vsel %vm7704_vm15, %v1913_v3, %v1851_v12  ;;  %vm7707_vm15 = vcmask 605184  }
 0x46c   : > { %5223 = vrot.lane.b32.xlu0 %v6993_v63, %s5493_s11  ;;  %v1939_v7 = vrot.slane %v1914_v49, 4 }
 0x46d   : > { %v1887_v37 = vpop.permute.xlu0 %1886  ;;  %v2389_v51 = vpop.permute.xlu1 %2388 }
 0x46e   : > { %v1923_v30 = vsel %vm1378_vm14, %v6969_v25, %v1887_v37  ;;  %1957 = vst [vmem:[#allocation2 + $0x28] sm:$0xf0] %v1939_v7  ;;  %v2461_v50 = vsel %vm7705_vm2, %v2385_v28, %v2389_v51  ;;  %v1379_v37 = vsel %vm1378_vm14, %v6847_v57, %v6945_v24 }
 0x46f   : > { %v1924_v38 = vsel %vm1380_vm13, %v1923_v30, %v6892_v55  ;;  %v2462_v23 = vsel %vm7706_vm12, %v2461_v50, %v2393_v46  ;;  %v7006_v14 = vld [vmem:[#allocation2 + $0x68] sm:$0xf]  ;;  %v7018_v42 = vld [vmem:[#allocation2 + $0x30] sm:$0xff] }
 0x470   : > { %v1942_v19 = vrot.slane %v1924_v38, 4  ;;  %v2463_v12 = vsel %vm7707_vm15, %v2462_v23, %v2397_v5  ;;  %v5217_v39 = vpack.i.bf16 %v7006_v14, %v6955_v54  ;;  %v4999_v31 = vpack.c.bf16 %v7006_v14, %v6989_v41 }
 0x471   : > { %v2429_v2 = vpop.permute.xlu0 %2428  ;;  %v2464_v55 = vsel %vm7708_vm10, %v2463_v12, %v6959_v1  ;;  %v2405_v60 = vpop.permute.xlu1 %2404  ;;  %vm1390_vm10 = vcmask 797696  }
 0x472   : > { %1961 = vst.msk [vmem:[#allocation2 + $0x40] sm:$0xf0] %vm1960_vm1, %v1942_v19  ;;  %2480 = vst [vmem:[#allocation2 + $0x70] sm:$0xf] %v2464_v55  ;;  %5218 = vrot.lane.b32.xlu1 %v5217_v39, %s5493_s11  ;;  %v2465_v21 = vsel %vm1362_vm3, %v6959_v1, %v2405_v60  ;;  %vm2590_vm3 = vcmask 1043456  }
 0x473   : > { %v2466_v0 = vsel %vm1364_vm4, %v2465_v21, %v6963_v56  ;;  %vm5494_vm4 = vmmov 1  }
 0x475   : > { %v2437_v28 = vpop.permute.xlu0 %2436  ;;  %v1871_v46 = vpop.permute.xlu1 %1870  ;;  %v7016_v11 = vld [vmem:[#allocation2 + $0x28] sm:$0xff] }
 0x476   : > { %v1919_v5 = vsel %vm1370_vm0, %v6961_v8, %v1871_v46  ;;  %v5232_v59 = vpack.i.bf16 %v7018_v42, %v7016_v11  ;;  %v2473_v10 = vsel %vm1378_vm14, %v6973_v53, %v2437_v28 }
 0x477   : > { %v1920_v4 = vsel %vm1372_vm5, %v1919_v5, %v6965_v27 }
 0x478   : > { %v1921_v43 = vsel %vm1374_vm6, %v1920_v4, %v1879_v61  ;;  %5233 = vrot.lane.b32.xlu0 %v5232_v59, %s5493_s11 }
 0x479   : > { %v2441_v32 = vpop.permute.xlu0 %2440  ;;  %v1922_v8 = vsel %vm1376_vm7, %v1921_v43, %v6969_v25  ;;  %v2413_v62 = vpop.permute.xlu1 %2412  ;;  %v7038_v27 = vld [vmem:[#allocation2 + $0x70] sm:$0xf] }
 0x47a   : > { %v2474_v1 = vsel %vm1380_vm13, %v2473_v10, %v2441_v32  ;;  %v1941_v20 = vrot.slane %v1922_v8, 4  ;;  %v2467_v35 = vsel %vm1366_vm8, %v2466_v0, %v2413_v62  ;;  %v4996_v61 = vpack.c.bf16 %v7038_v27, %v7016_v11 }
 0x47b   : > { %2483 = vst.msk [vmem:[#allocation2 + $0x88] sm:$0xf] %vm1390_vm10, %v2474_v1  ;;  %v2468_v33 = vsel %vm1368_vm9, %v2467_v35, %v6967_v40  ;;  %v7113_v1 = vld [vmem:[#allocation8 + $0x8] sm:$0xff]  ;;  %v5495_v8 = vmov 0   ;;  %v5496_v62 = vmov 1966171168  }
 0x47c   : > { %1959 = vst [vmem:[#allocation2 + $0x38] sm:$0xf0] %v1941_v20  ;;  %2481 = vst [vmem:[#allocation2 + $0x78] sm:$0xf] %v2468_v33  ;;  %5292 = vset.pattern.permute.xlu0 %v5495_v8  ;;  %v4465_v0 = vunpack.c.l.s4 %v5496_v62  ;;  %5293 = vset.pattern.permute.xlu1 %v5495_v8  ;;  %v2484_v20 = vld [vmem:[%s7582_s4] sm:$0xff]  ;;  %vm3814_vm8 = vcmask 146432  }
 0x47d   : > { %v2421_v25 = vpop.permute.xlu1 %2420  ;;  %v4463_v35 = vcombine.high %v2484_v20, %v2484_v20  ;;  %vm3831_vm9 = vcmask 80896  }
 0x47e   : > { %v2469_v3 = vsel %vm1370_vm0, %v6967_v40, %v2421_v25  ;;  %vm2560_vm0 = vcmask 1039360   ;;  %v4466_v33 = vunpack.c.0.s8 %v4465_v0  ;;  %v7711_v25 = vld [vmem:[#allocation13_spill] sm:$0xff] }
 0x47f   : > { %v2470_v56 = vsel %vm1372_vm5, %v2469_v3, %v6971_v18  ;;  %vm7103_vm5 = vmpackc.low %vm2590_vm3, %vm5494_vm4 }
 0x480   : > { %v2471_v49 = vsel %vm1374_vm6, %v2470_v56, %v2429_v2  ;;  %vm2586_vm6 = vcmask 97280   ;;  %v4469_v3 = vsub.s32 %v4466_v33, %v7711_v25 }
 0x481   : > { %v2472_v7 = vsel %vm1376_vm7, %v2471_v49, %v6973_v53  ;;  %v1317_v30 = vpop.permute.xlu1 %1316  ;;  %v7123_v49 = vsub.s32 0, %v7711_v25  ;;  %vm5498_vm7 = vmmov 0  }
 0x482   : > { %2482 = vst [vmem:[#allocation2 + $0x80] sm:$0xf] %v2472_v7  ;;  %v1381_v51 = vsel %vm1380_vm13, %v1379_v37, %v1317_v30  ;;  %v7066_v24 = vld [vmem:[#allocation2 + $0x88] sm:$0xf]  ;;  %v4470_v56 = vrot.slane %v2484_v20, %v4469_v3  ;;  %v4477_v37 = vrot.slane %v4463_v35, %v4469_v3  ;;  %vm7712_vm13 = vcmask 261120  }
 0x483   : > { %1391 = vst.msk [vmem:[#allocation2 + $0x40] sm:$0xf] %vm1390_vm10, %v1381_v51  ;;  %v7057_v38 = vld [vmem:[#allocation2 + $0x78] sm:$0xf]  ;;  %vm7713_vm14 = vmmov %vm7712_vm13  ;;  %vm3848_vm10 = vcmask 15360  }
 0x484   : > { %v5227_v40 = vpack.i.bf16 %v7057_v38, %v7038_v27  ;;  %v5005_v18 = vpack.c.bf16 %v7057_v38, %v7018_v42  ;;  %v7068_v53 = vld [vmem:[#allocation2 + $0x38] sm:$0xff]  ;;  %v4486_v7 = vrot.slane %v4470_v56, %v4469_v3  ;;  %v4478_v30 = vcombine.high %v4470_v56, %v4470_v56  ;;  %vm7714_vm1 = vmmov %vm7712_vm13 }
 0x485   : > { %v4479_v51 = vcombine.high %v4477_v37, %v4477_v37  ;;  %vm7715_vm2 = vmmov %vm7714_vm1 }
 0x486   : > { %5228 = vrot.lane.b32.xlu1 %v5227_v40, %s5493_s11  ;;  %vm7716_vm12 = vmmov %vm7714_vm1 }
 0x487   : > { %vm7717_vm15 = vmmov %vm7714_vm1 }
 0x488   : > { %vm7718_vm3 = vmmov %vm7714_vm1 }
 0x489   : > { %v7064_v57 = vld [vmem:[#allocation2 + $0x80] sm:$0xf]  ;;  %vm7719_vm4 = vmmov %vm7714_vm1 }
 0x48a   : > { %v5242_v50 = vpack.i.bf16 %v7066_v24, %v7064_v57  ;;  %v7072_v19 = vld [vmem:[#allocation2 + $0x40] sm:$0xff]  ;;  %v5002_v23 = vpack.c.bf16 %v7064_v57, %v7068_v53 }
 0x48b   : > { %v5237_v2 = vpack.i.bf16 %v7072_v19, %v7068_v53  ;;  %v5009_v12 = vpack.c.bf16 %v7066_v24, %v7072_v19 }
 0x48c   : > { %5243 = vrot.lane.b32.xlu1 %v5242_v50, %s5493_s11 }
 0x48d   : > { %5238 = vrot.lane.b32.xlu0 %v5237_v2, %s5493_s11  ;;  %s5510_s11 = smov 104  }
 0x490   : > { %5253 = vrot.lane.b32.xlu1 %v6913_v9, %s5478_s6 }
 0x491   : > { %5248 = vrot.lane.b32.xlu0 %v6882_v26, %s5478_s6 }
 0x494   : > { %5263 = vrot.lane.b32.xlu1 %v6993_v63, %s5478_s6 }
 0x495   : > { %5258 = vrot.lane.b32.xlu0 %v6940_v22, %s5478_s6 }
 0x498   : > { %5278 = vrot.lane.b32.xlu1 %v5232_v59, %s5478_s6 }
 0x499   : > { %5268 = vrot.lane.b32.xlu0 %v5217_v39, %s5478_s6 }
 0x49c   : > { %5283 = vrot.lane.b32.xlu1 %v5237_v2, %s5478_s6  ;;  %v4508_v2 = vcombine.high %v4486_v7, %v4486_v7 }
 0x49d   : > { %5273 = vrot.lane.b32.xlu0 %v5227_v40, %s5478_s6  ;;  %v4515_v40 = vrot.slane %v4486_v7, %v7123_v49 }
 0x4a1   : > { %5288 = vrot.lane.b32.xlu0 %v5242_v50, %s5478_s6  ;;  %v4500_v50 = vrot.slane %v4478_v30, %v4469_v3  ;;  %s5511_s6 = smov 70  }
 0x4a5   : > { %4545 = vperm.xlu0 %5292, %v4515_v40  }
 0x4a9   : > { %v7095_v9 = vpop.permute.xlu0 %5203 }
 0x4aa   : > { %v5206_v26 = vunpack.i.h.bf16 %v7095_v9  ;;  %v5205_v63 = vunpack.i.l.bf16 %v7095_v9 }
 0x4ac   : > { %v2570_v5 = vsel %vm2560_vm0, %v5205_v63, %v5206_v26 }
 0x4ad   : > { %v5209_v55 = vpop.permute.xlu1 %5208 }
 0x4ae   : > { %v5211_v60 = vunpack.i.h.bf16 %v5209_v55  ;;  %v5210_v22 = vunpack.i.l.bf16 %v5209_v55  ;;  %v4519_v55 = vrot.slane %v4500_v50, %v7123_v49 }
 0x4b0   : > { %v2569_v10 = vsel %vm2560_vm0, %v5211_v60, %v5205_v63  ;;  %v4510_v63 = vcombine.high %v4500_v50, %v4500_v50  ;;  %v7127_v60 = vrot.slane %v4479_v51, %v4469_v3  ;;  %4549 = vperm.xlu1 %5293, %v4519_v55  }
 0x4b1   : > { %v5214_v28 = vpop.permute.xlu1 %5213 }
 0x4b2   : > { %v5216_v46 = vunpack.i.h.bf16 %v5214_v28  ;;  %v5215_v39 = vunpack.i.l.bf16 %v5214_v28  ;;  %v4527_v28 = vrot.slane %v4510_v63, %v7123_v49 }
 0x4b4   : > { %v2562_v21 = vsel %vm2560_vm0, %v5215_v39, %v5216_v46  ;;  %v2561_v4 = vsel %vm2560_vm0, %v5210_v22, %v5215_v39  ;;  %v4523_v22 = vrot.slane %v4508_v2, %v7123_v49  ;;  %v7131_v39 = vrot.slane %v4477_v37, %v4469_v3  ;;  %4557 = vperm.xlu0 %5292, %v4527_v28  }
 0x4b5   : > { %v4956_v32 = vpack.c.bf16 %v2570_v5, %v2562_v21  ;;  %v4959_v43 = vpack.c.bf16 %v2569_v10, %v2561_v4  ;;  %v4535_v21 = vrot.slane %v7127_v60, %v7123_v49 }
 0x4b6   : > { %4553 = vperm.xlu1 %5293, %v4523_v22   ;;  %v4531_v5 = vrot.slane %v7131_v39, %v7123_v49 }
 0x4b7   : > { %4958 = vmatprep.subr.msk.bf16.mxu0 %vm7103_vm5, %v4956_v32 }
 0x4b8   : > { %4961 = vmatpush1.bf16.msk.msra.mxu0 %vm7103_vm5, %v4959_v43  ;;  %4565 = vperm.xlu0 %5292, %v4535_v21  }
 0x4ba   : > { %4561 = vperm.xlu1 %5293, %v4531_v5  }
 0x4bb   : > { %4789 = vmatmul.mubr.msk.f32.vlgmr.msra.gmra.mrb[0].mxu0 %vm2586_vm6, %v7113_v1 }
 0x4bc   : > { %2744 = vmatprep.mubr.f32.mxu0 %v7636_v16 }
 0x4de   : > { %v5224_v4 = vpop.permute.xlu0 %5223 }
 0x4df   : > { %v5226_v10 = vunpack.i.h.bf16 %v5224_v4  ;;  %v5225_v32 = vunpack.i.l.bf16 %v5224_v4 }
 0x4e1   : > { %v2563_v0 = vsel %vm2560_vm0, %v5216_v46, %v5225_v32  ;;  %v2564_v20 = vsel %vm2560_vm0, %v5225_v32, %v5226_v10 }
 0x4e4   : > { %v5219_v43 = vpop.permute.xlu1 %5218 }
 0x4e5   : > { %v5221_v8 = vunpack.i.h.bf16 %v5219_v43  ;;  %v5220_v62 = vunpack.i.l.bf16 %v5219_v43 }
 0x4e7   : > { %v2571_v35 = vsel %vm2560_vm0, %v5206_v26, %v5220_v62  ;;  %v2572_v33 = vsel %vm2560_vm0, %v5220_v62, %v5221_v8 }
 0x4e8   : > { %v4962_v25 = vpack.c.bf16 %v2572_v33, %v2564_v20  ;;  %v4965_v3 = vpack.c.bf16 %v2571_v35, %v2563_v0  ;;  %v5497_v35 = vmov 0.0|0.0  }
 0x4ea   : > { %4964 = vmatprep.subr.msk.bf16.mxu0 %vm7103_vm5, %v4962_v25  ;;  %v5234_v46 = vpop.permute.xlu0 %5233 }
 0x4eb   : > { %4967 = vmatpush1.bf16.msk.msra.mxu0 %vm7103_vm5, %v4965_v3  ;;  %v5236_v56 = vunpack.i.h.bf16 %v5234_v46  ;;  %v5235_v9 = vunpack.i.l.bf16 %v5234_v46  ;;  %v2485_v3 = vld [vmem:[#allocation8] sm:$0xff] }
 0x4ed   : > { %v2565_v30 = vsel %vm2560_vm0, %v5226_v10, %v5235_v9  ;;  %v2566_v51 = vsel %vm2560_vm0, %v5235_v9, %v5236_v56 }
 0x4ee   : > { %4792 = vmatmul.mubr.msk.f32.vlgmr.msra.gmra.mrb[2].mxu0 %vm2586_vm6, %v7113_v1 }
 0x4ef   : > { %2815 = vmatprep.mubr.f32.mxu0 %v7636_v16 }
 0x4f8   : > { %v5229_v37 = vpop.permute.xlu1 %5228 }
 0x4f9   : > { %v5231_v26 = vunpack.i.h.bf16 %v5229_v37  ;;  %v5230_v7 = vunpack.i.l.bf16 %v5229_v37 }
 0x4fb   : > { %v2573_v40 = vsel %vm2560_vm0, %v5221_v8, %v5230_v7  ;;  %v2574_v50 = vsel %vm2560_vm0, %v5230_v7, %v5231_v26 }
 0x4fc   : > { %v4968_v2 = vpack.c.bf16 %v2574_v50, %v2566_v51  ;;  %v4971_v55 = vpack.c.bf16 %v2573_v40, %v2565_v30  ;;  %v3339_v30 = vld [vmem:[#allocation8 + $0x10] sm:$0xff] }
 0x4fe   : > { %v5244_v63 = vpop.permute.xlu1 %5243  ;;  %4970 = vmatprep.subr.msk.bf16.mxu0 %vm7103_vm5, %v4968_v2 }
 0x4ff   : > { %v5246_v28 = vunpack.i.h.bf16 %v5244_v63  ;;  %v5245_v22 = vunpack.i.l.bf16 %v5244_v63  ;;  %v5239_v21 = vpop.permute.xlu0 %5238  ;;  %4973 = vmatpush1.bf16.msk.msra.mxu0 %vm7103_vm5, %v4971_v55 }
 0x500   : > { %v5241_v5 = vunpack.i.h.bf16 %v5239_v21  ;;  %v5240_v4 = vunpack.i.l.bf16 %v5239_v21 }
 0x501   : > { %v2575_v10 = vsel %vm2560_vm0, %v5231_v26, %v5245_v22  ;;  %v2576_v32 = vsel %vm2560_vm0, %v5245_v22, %v5246_v28 }
 0x502   : > { %v2567_v43 = vsel %vm2560_vm0, %v5236_v56, %v5240_v4  ;;  %v2568_v8 = vsel %vm2560_vm0, %v5240_v4, %v5241_v5  ;;  %4795 = vmatmul.mubr.msk.f32.vlgmr.msra.gmra.mrb[4].mxu0 %vm2586_vm6, %v7113_v1  ;;  %v4981_v33 = vpack.c.bf16 %v5246_v28, %v5241_v5  ;;  %v5254_v46 = vpop.permute.xlu1 %5253  ;;  %vm3862_vm0 = vcmask 228352  }
 0x503   : > { %v4974_v62 = vpack.c.bf16 %v2576_v32, %v2568_v8  ;;  %v4977_v0 = vpack.c.bf16 %v2575_v10, %v2567_v43  ;;  %2886 = vmatprep.mubr.f32.mxu0 %v7636_v16  ;;  %v7169_v20 = vpop.permute.xlu0 %5248  ;;  %v5255_v48 = vunpack.i.l.bf16 %v5254_v46 }
 0x504   : > { %v5251_v58 = vunpack.i.h.bf16 %v7169_v20  ;;  %v5250_v29 = vunpack.i.l.bf16 %v7169_v20 }
 0x505   : > { %4976 = vmatprep.subr.msk.bf16.mxu0 %vm7103_vm5, %v4974_v62 }
 0x506   : > { %4979 = vmatpush1.bf16.msk.msra.mxu0 %vm7103_vm5, %v4977_v0  ;;  %v5264_v44 = vpop.permute.xlu1 %5263  ;;  %v3377_v54 = vsel %vm1346_vm11, %v5250_v29, %v5251_v58 }
 0x507   : > { %4980 = vmatprep.subr.bf16.mxu0 %v5497_v35  ;;  %v5259_v25 = vpop.permute.xlu0 %5258  ;;  %v5265_v11 = vunpack.i.l.bf16 %v5264_v44 }
 0x508   : > { %v5261_v52 = vunpack.i.h.bf16 %v5259_v25 }
 0x509   : > { %4798 = vmatmul.mubr.msk.f32.vlgmr.msra.gmra.mrb[6].mxu0 %vm2586_vm6, %v7113_v1  ;;  %v3378_v51 = vsel %vm1346_vm11, %v5251_v58, %v5265_v11 }
 0x50a   : > { %4983 = vmatpush3.bf16.msk.msra.mxu0 %vm7103_vm5, %v4981_v33  ;;  %4931 = vmatprep.mubr.msk.f32.mxu0 %vm5498_vm7, %v7636_v16  ;;  %v5279_v14 = vpop.permute.xlu1 %5278 }
 0x50b   : > { %4986 = vmatprep.subr.msk.bf16.mxu0 %vm7103_vm5, %v4984_v17  ;;  %v5269_v6 = vpop.permute.xlu0 %5268  ;;  %v5256_v17 = vunpack.i.h.bf16 %v5254_v46  ;;  %v5281_v56 = vunpack.i.h.bf16 %v5279_v14  ;;  %v5280_v9 = vunpack.i.l.bf16 %v5279_v14 }
 0x50c   : > { %v5270_v41 = vunpack.i.l.bf16 %v5269_v6 }
 0x50d   : > { %4932 = vmatmul.mubr.msk.f32.vlgmr.msra.gmra.mrb[8].mxu0 %vm2586_vm6, %v7113_v1  ;;  %v3385_v34 = vsel %vm1346_vm11, %v5255_v48, %v5256_v17  ;;  %v3381_v40 = vsel %vm1346_vm11, %v5280_v9, %v5281_v56 }
 0x50e   : > { %4989 = vmatpush1.bf16.msk.msra.mxu0 %vm7103_vm5, %v4987_v36  ;;  %3048 = vmatprep.mubr.f32.mxu0 %v7636_v16  ;;  %v5012_v27 = vpack.c.bf16 %v3385_v34, %v3377_v54  ;;  %v3386_v37 = vsel %vm1346_vm11, %v5256_v17, %v5270_v41  ;;  %v5284_v7 = vpop.permute.xlu1 %5283 }
 0x50f   : > { %4992 = vmatprep.subr.msk.bf16.mxu0 %vm7103_vm5, %v4990_v13  ;;  %v5274_v36 = vpop.permute.xlu0 %5273  ;;  %v5271_v13 = vunpack.i.h.bf16 %v5269_v6  ;;  %v5021_v50 = vpack.c.bf16 %v3386_v37, %v3378_v51  ;;  %v5286_v2 = vunpack.i.h.bf16 %v5284_v7  ;;  %v5285_v55 = vunpack.i.l.bf16 %v5284_v7 }
 0x510   : > { %v5276_v42 = vunpack.i.h.bf16 %v5274_v36  ;;  %v5275_v38 = vunpack.i.l.bf16 %v5274_v36 }
 0x511   : > { %4803 = vmatmul.mubr.msk.f32.vlgmr.msra.gmra.mrb[0].mxu0 %vm2586_vm6, %v2485_v3  ;;  %v3387_v53 = vsel %vm1346_vm11, %v5270_v41, %v5271_v13  ;;  %v3383_v5 = vsel %vm1346_vm11, %v5285_v55, %v5286_v2  ;;  %v3382_v43 = vsel %vm1346_vm11, %v5281_v56, %v5285_v55 }
 0x512   : > { %4995 = vmatpush1.bf16.msk.msra.mxu0 %vm7103_vm5, %v4993_v47  ;;  %3119 = vmatprep.mubr.f32.mxu0 %v7636_v16  ;;  %v5260_v47 = vunpack.i.l.bf16 %v5259_v25  ;;  %v3389_v24 = vsel %vm1346_vm11, %v5275_v38, %v5276_v42  ;;  %v3388_v63 = vsel %vm1346_vm11, %v5271_v13, %v5275_v38 }
 0x513   : > { %4998 = vmatprep.subr.msk.bf16.mxu0 %vm7103_vm5, %v4996_v61  ;;  %v3384_v61 = vsel %vm1346_vm11, %v5261_v52, %v5255_v48  ;;  %v5024_v28 = vpack.c.bf16 %v3389_v24, %v3381_v40  ;;  %v4509_v48 = vcombine.high %v7131_v39, %v7131_v39 }
 0x514   : > { %v3376_v57 = vsel %vm1346_vm11, %v5260_v47, %v5250_v29 }
 0x515   : > { %4806 = vmatmul.mubr.msk.f32.vlgmr.msra.gmra.mrb[2].mxu0 %vm2586_vm6, %v2485_v3  ;;  %v5015_v1 = vpack.c.bf16 %v3384_v61, %v3376_v57  ;;  %v4539_v58 = vrot.slane %v4509_v48, %v7123_v49 }
 0x516   : > { %5001 = vmatpush1.bf16.msk.msra.mxu0 %vm7103_vm5, %v4999_v31  ;;  %3190 = vmatprep.mubr.f32.mxu0 %v7636_v16  ;;  %v5266_v31 = vunpack.i.h.bf16 %v5264_v44  ;;  %v4511_v44 = vcombine.high %v7127_v60, %v7127_v60 }
 0x517   : > { %5004 = vmatprep.subr.msk.bf16.mxu0 %vm7103_vm5, %v5002_v23 }
 0x518   : > { %v3379_v23 = vsel %vm1346_vm11, %v5265_v11, %v5266_v31  ;;  %v3380_v21 = vsel %vm1346_vm11, %v5266_v31, %v5280_v9  ;;  %v4543_v17 = vrot.slane %v4511_v44, %v7123_v49 }
 0x519   : > { %4809 = vmatmul.mubr.msk.f32.vlgmr.msra.gmra.mrb[4].mxu0 %vm2586_vm6, %v2485_v3  ;;  %v5018_v26 = vpack.c.bf16 %v3387_v53, %v3379_v23  ;;  %v5027_v4 = vpack.c.bf16 %v3388_v63, %v3380_v21 }
 0x51a   : > { %5007 = vmatpush1.bf16.msk.msra.mxu0 %vm7103_vm5, %v5005_v18  ;;  %3261 = vmatprep.mubr.f32.mxu0 %v7636_v16  ;;  %v5289_v18 = vpop.permute.xlu0 %5288 }
 0x51b   : > { %5008 = vmatprep.subr.bf16.mxu0 %v5497_v35  ;;  %v5291_v19 = vunpack.i.h.bf16 %v5289_v18 }
 0x51d   : > { %4812 = vmatmul.mubr.msk.f32.vlgmr.msra.gmra.mrb[6].mxu0 %vm2586_vm6, %v2485_v3  ;;  %v5037_v62 = vpack.c.bf16 %v5291_v19, %v5286_v2 }
 0x51e   : > { %5011 = vmatpush3.bf16.msk.msra.mxu0 %vm7103_vm5, %v5009_v12  ;;  %4938 = vmatprep.mubr.msk.f32.mxu0 %vm5498_vm7, %v7636_v16  ;;  %v5290_v12 = vunpack.i.l.bf16 %v5289_v18 }
 0x51f   : > { %5014 = vmatprep.subr.msk.bf16.mxu0 %vm7103_vm5, %v5012_v27 }
 0x520   : > { %v3391_v22 = vsel %vm1346_vm11, %v5290_v12, %v5291_v19  ;;  %v3390_v10 = vsel %vm1346_vm11, %v5276_v42, %v5290_v12  ;;  %vm3797_vm11 = vcmask 211968  }
 0x521   : > { %4939 = vmatmul.mubr.msk.f32.vlgmr.msra.gmra.mrb[8].mxu0 %vm2586_vm6, %v2485_v3  ;;  %v5030_v32 = vpack.c.bf16 %v3391_v22, %v3383_v5  ;;  %v5033_v8 = vpack.c.bf16 %v3390_v10, %v3382_v43 }
 0x522   : > { %5017 = vmatpush1.bf16.msk.msra.mxu0 %vm7103_vm5, %v5015_v1  ;;  %3486 = vmatprep.mubr.f32.mxu0 %v7636_v16 }
 0x523   : > { %5020 = vmatprep.subr.msk.bf16.mxu0 %vm7103_vm5, %v5018_v26 }
 0x524   : > { %v7298_v52 = vpop.permute.xlu0 %4545 }
 0x525   : > { %4817 = vmatmul.mubr.msk.f32.vlgmr.msra.gmra.mrb[0].mxu0 %vm2586_vm6, %v3339_v30 }
 0x526   : > { %5023 = vmatpush1.bf16.msk.msra.mxu0 %vm7103_vm5, %v5021_v50  ;;  %3557 = vmatprep.mubr.f32.mxu0 %v7636_v16 }
 0x527   : > { %5026 = vmatprep.subr.msk.bf16.mxu0 %vm7103_vm5, %v5024_v28 }
 0x529   : > { %4820 = vmatmul.mubr.msk.f32.vlgmr.msra.gmra.mrb[2].mxu0 %vm2586_vm6, %v3339_v30 }
 0x52a   : > { %5029 = vmatpush1.bf16.msk.msra.mxu0 %vm7103_vm5, %v5027_v4  ;;  %3628 = vmatprep.mubr.f32.mxu0 %v7636_v16 }
 0x52b   : > { %5032 = vmatprep.subr.msk.bf16.mxu0 %vm7103_vm5, %v5030_v32 }
 0x52d   : > { %4823 = vmatmul.mubr.msk.f32.vlgmr.msra.gmra.mrb[4].mxu0 %vm2586_vm6, %v3339_v30 }
 0x52e   : > { %5035 = vmatpush1.bf16.msk.msra.mxu0 %vm7103_vm5, %v5033_v8  ;;  %3699 = vmatprep.mubr.f32.mxu0 %v7636_v16 }
 0x52f   : > { %5036 = vmatprep.subr.bf16.mxu0 %v5497_v35  ;;  %v7296_v29 = vpop.permute.xlu1 %4549 }
 0x531   : > { %4826 = vmatmul.mubr.msk.f32.vlgmr.msra.gmra.mrb[6].mxu0 %vm2586_vm6, %v3339_v30 }
 0x532   : > { %5039 = vmatpush3.bf16.msk.msra.mxu0 %vm7103_vm5, %v5037_v62  ;;  %4945 = vmatprep.mubr.msk.f32.mxu0 %vm5498_vm7, %v7636_v16  ;;  %vm7720_vm5 = vmmov %vm7714_vm1 }
 0x533   : > { %v7302_v60 = vpop.permute.xlu0 %4557  ;;  %vm7721_vm7 = vmmov %vm7714_vm1 }
 0x535   : > { %4946 = vmatmul.mubr.msk.f32.vlgmr.msra.gmra.mrb[8].mxu0 %vm2586_vm6, %v3339_v30  ;;  %v7300_v47 = vpop.permute.xlu1 %4553 }
 0x537   : > { %v7306_v34 = vpop.permute.xlu0 %4565 }
 0x539   : > { %v7304_v36 = vpop.permute.xlu1 %4561 }
 0x5f8   : > { %v7285_v0 = vpop.f32.mrb[0].mxu0 }
 0x5f9   : > { %3789 = vrot.lane.b32.xlu0 %v7285_v0, %s5499_s30  ;;  %3786 = vrot.lane.b32.xlu1 %v7285_v0, %s5500_s7  ;;  %v3490_v20 = vpop.f32.mrb[1].mxu0  ;;  %s5513_s30 = smov 2   ;;  %s5514_s7 = smov 28  }
 0x5fc   : > { %v3559_v35 = vpop.f32.mrb[2].mxu0 }
 0x5fd   : > { %3793 = vrot.lane.b32.xlu1 %v7285_v0, %s5501_s8  ;;  %3795 = vrot.lane.b32.xlu0 %v3490_v20, %s5501_s8  ;;  %v3561_v59 = vpop.f32.mrb[3].mxu0  ;;  %s5515_s8 = smov 96  }
 0x600   : > { %v3630_v33 = vpop.f32.mrb[4].mxu0 }
 0x601   : > { %3800 = vrot.lane.b32.xlu1 %v3490_v20, %s5502_s17  ;;  %3803 = vrot.lane.b32.xlu0 %v3490_v20, %s5503_s9  ;;  %v3632_v16 = vpop.f32.mrb[5].mxu0  ;;  %s5516_s17 = smov 62   ;;  %s5517_s9 = smov 20  }
 0x604   : > { %v3701_v25 = vpop.f32.mrb[6].mxu0 }
 0x605   : > { %3806 = vrot.lane.b32.xlu1 %v3490_v20, %s5504_s15  ;;  %3810 = vrot.lane.b32.xlu0 %v3490_v20, %s5505_s16  ;;  %v3703_v3 = vpop.f32.mrb[7].mxu0  ;;  %s5518_s15 = smov 122  }
 0x608   : > { %v3772_v46 = vpop.f32.mrb[8].mxu0 }
 0x609   : > { %3817 = vrot.lane.b32.xlu0 %v3559_v35, %s5506_s10  ;;  %3812 = vrot.lane.b32.xlu1 %v3559_v35, %s5505_s16  ;;  %v4947_v6 = vpop.f32.mrb[9].mxu0  ;;  %s5519_s16 = smov 88   ;;  %s5520_s10 = smov 54  }
 0x60d   : > { %3823 = vrot.lane.b32.xlu0 %v3559_v35, %s5507_s13  ;;  %3820 = vrot.lane.b32.xlu1 %v3559_v35, %s5508_s24  ;;  %s5521_s13 = smov 12   ;;  %s5522_s24 = smov 114  }
 0x611   : > { %3827 = vrot.lane.b32.xlu1 %v3559_v35, %s5509_s26  ;;  %3829 = vrot.lane.b32.xlu0 %v3561_v59, %s5509_s26  ;;  %s5523_s26 = smov 80  }
 0x615   : > { %3834 = vrot.lane.b32.xlu1 %v3561_v59, %s5510_s11  ;;  %3837 = vrot.lane.b32.xlu0 %v3561_v59, %s5511_s6  ;;  %s5524_s11 = smov 46   ;;  %s5525_s6 = smov 4  }
 0x619   : > { %3840 = vrot.lane.b32.xlu1 %v3561_v59, %s5512_s12  ;;  %3844 = vrot.lane.b32.xlu0 %v3561_v59, %s5513_s30  ;;  %s5526_s12 = smov 106  }
 0x61d   : > { %3858 = vrot.lane.b32.xlu0 %v3630_v33, %s5514_s7  ;;  %3846 = vrot.lane.b32.xlu1 %v3630_v33, %s5513_s30  ;;  %s5527_s30 = smov 72  }
 0x621   : > { %3851 = vrot.lane.b32.xlu0 %v3630_v33, %s5515_s8  ;;  %3854 = vrot.lane.b32.xlu1 %v3630_v33, %s5516_s17  ;;  %s5529_s8 = smov 98   ;;  %s4758_s17 = sshll.u32 %s5743_s14, 8 }
 0x625   : > { %3875 = vrot.lane.b32.xlu0 %v3632_v16, %s5517_s9  ;;  %3860 = vrot.lane.b32.xlu1 %v3632_v16, %s5514_s7  ;;  %s5528_s7 = smov 38  }
 0x629   : > { %3865 = vrot.lane.b32.xlu0 %v3632_v16, %s5518_s15  ;;  %3868 = vrot.lane.b32.xlu1 %v3632_v16, %s5519_s16  ;;  %s4835_s15 = sshll.u32 %s5583_s22, 12 }
 0x62d   : > { %3871 = vrot.lane.b32.xlu0 %v3632_v16, %s5520_s10  ;;  %3877 = vrot.lane.b32.xlu1 %v3701_v25, %s5517_s9  ;;  %s7345_s9 = scalar_lea.vmem [#allocation9], %s4758_s17 }
 0x62e   : > { %s4654_s16 = sshll.u32 %s7345_s9, 4  ;;  %s7525_s16 = int_to_ptr.vmem [resolvable:$true] %s4654_s16 }
 0x631   : > { %3892 = vrot.lane.b32.xlu0 %v3701_v25, %s5521_s13  ;;  %3882 = vrot.lane.b32.xlu1 %v3701_v25, %s5522_s24  ;;  %s4641_s24 = scalar_lea.sflag [#allocation5], %s5743_s14 }
 0x635   : > { %3885 = vrot.lane.b32.xlu0 %v3701_v25, %s5523_s26  ;;  %3888 = vrot.lane.b32.xlu1 %v3701_v25, %s5524_s11  ;;  %s5381_s26 = scalar_lea.vmem %s7525_s16, 4096  ;;  %s5530_s11 = smov [#allocation9]  }
 0x636   : > { %p5382_p8 = scmp.ne.s32.totalorder %s7525_s16, %s5381_s26 }
 0x638   : > { %p5383_p2 = pnand %p5382_p8, %p7743_p0 }
 0x639   : > { %3908 = vrot.lane.b32.xlu0 %v3703_v3, %s5525_s6  ;;  %3894 = vrot.lane.b32.xlu1 %v3703_v3, %s5521_s13  ;;  %s7523_s13 = scalar_lea.hbm %s7583_s5, %s4835_s15 }
 0x63a   : > { %p5384_p3 = pneg %p5383_p2 }
 0x63d   : > { %3898 = vrot.lane.b32.xlu0 %v3703_v3, %s5526_s12  ;;  %3901 = vrot.lane.b32.xlu1 %v3703_v3, %s5527_s30 }
 0x641   : > { %3904 = vrot.lane.b32.xlu0 %v3703_v3, %s5528_s7  ;;  %3910 = vrot.lane.b32.xlu1 %v3772_v46, %s5525_s6  ;;  %s5385_s6 = sshll.u32 %s5530_s11, 4  ;;  %s5386_s6 = int_to_ptr.vmem [resolvable:$false] %s5385_s6 }
 0x642   : > { %s5387_s12 = scalar_lea.vmem %s5386_s6, 8192  ;;  %p5388_p7 = scmp.lt.s32.totalorder %s7525_s16, %s5386_s6 }
 0x643   : > { %p5389_p9 = scmp.lt.s32.totalorder %s5387_s12, %s5381_s26 }
 0x645   : > { %4573 = vperm.xlu0 %5292, %v4543_v17   ;;  %3915 = vrot.lane.b32.xlu1 %v3772_v46, %s5529_s8  ;;  %p5390_p12 = por %p5389_p9, %p5388_p7 }
 0x647   : > { %p5391_p1 = pnand %p5390_p12, %p5384_p3 }
 0x649   : > { %4569 = vperm.xlu1 %5293, %v4539_v58  }
 0x66b   : > { %v3790_v54 = vpop.permute.xlu0 %3789  ;;  %v3787_v39 = vpop.permute.xlu1 %3786 }
 0x66c   : > { %v3918_v57 = vcombine.low %v7285_v0, %v3790_v54  ;;  %v3919_v42 = vcombine.high %v7285_v0, %v3790_v54 }
 0x66e   : > { %v3926_v9 = vrot.slane %v3918_v57, %v5933_v45  ;;  %v7318_v19 = vrot.slane %v3919_v42, %v5933_v45 }
 0x66f   : > { %v3794_v13 = vpop.permute.xlu1 %3793  ;;  %v3796_v41 = vpop.permute.xlu0 %3795 }
 0x670   : > { %v3798_v14 = vsel %vm3797_vm11, %v3794_v13, %v3796_v41  ;;  %vm3879_vm11 = vcmask 162816  }
 0x671   : > { %v3934_v11 = vcombine.low %v3787_v39, %v3798_v14  ;;  %v3935_v53 = vcombine.high %v3787_v39, %v3798_v14 }
 0x673   : > { %v3801_v49 = vpop.permute.xlu1 %3800  ;;  %v3804_v31 = vpop.permute.xlu0 %3803  ;;  %v3942_v38 = vrot.slane %v3934_v11, %v5933_v45  ;;  %v7315_v37 = vrot.slane %v3935_v53, %v5933_v45 }
 0x675   : > { %v3982_v12 = vcombine.low %v3926_v9, %v3942_v38  ;;  %v3983_v30 = vcombine.high %v3926_v9, %v3942_v38  ;;  %v3998_v28 = vcombine.low %v7318_v19, %v7315_v37 }
 0x677   : > { %v3807_v27 = vpop.permute.xlu1 %3806  ;;  %v3811_v61 = vpop.permute.xlu0 %3810  ;;  %v3990_v4 = vrot.slane %v3982_v12, %v5946_v15  ;;  %v3997_v10 = vrot.slane %v3983_v30, %v5946_v15  ;;  %v4006_v20 = vrot.slane %v3998_v28, %v5946_v15 }
 0x678   : > { %v3950_v18 = vcombine.low %v3801_v49, %v3807_v27  ;;  %v3951_v23 = vcombine.high %v3801_v49, %v3807_v27 }
 0x67a   : > { %v3958_v51 = vrot.slane %v3950_v18, %v5933_v45  ;;  %v7322_v40 = vrot.slane %v3951_v23, %v5933_v45 }
 0x67b   : > { %v7311_v1 = vpop.permute.xlu0 %3817  ;;  %v3813_v56 = vpop.permute.xlu1 %3812 }
 0x67c   : > { %v3815_v26 = vsel %vm3814_vm8, %v3811_v61, %v3813_v56  ;;  %vm7722_vm8 = vmmov %vm7714_vm1 }
 0x67d   : > { %v3966_v7 = vcombine.low %v3804_v31, %v3815_v26  ;;  %v3967_v24 = vcombine.high %v3804_v31, %v3815_v26 }
 0x67f   : > { %v3974_v50 = vrot.slane %v3966_v7, %v5933_v45  ;;  %v7326_v2 = vrot.slane %v3967_v24, %v5933_v45  ;;  %v3824_v55 = vpop.permute.xlu0 %3823  ;;  %v3821_v63 = vpop.permute.xlu1 %3820 }
 0x680   : > { %v4054_v31 = vcombine.low %v7311_v1, %v3824_v55  ;;  %v4055_v27 = vcombine.high %v7311_v1, %v3824_v55 }
 0x681   : > { %v4014_v22 = vcombine.low %v3958_v51, %v3974_v50  ;;  %v4015_v21 = vcombine.high %v3958_v51, %v3974_v50  ;;  %v4030_v5 = vcombine.low %v7322_v40, %v7326_v2 }
 0x682   : > { %v4062_v18 = vrot.slane %v4054_v31, %v5933_v45  ;;  %v7367_v7 = vrot.slane %v4055_v27, %v5933_v45 }
 0x683   : > { %v4022_v32 = vrot.slane %v4014_v22, %v5946_v15  ;;  %v4029_v43 = vrot.slane %v4015_v21, %v5946_v15  ;;  %v4038_v8 = vrot.slane %v4030_v5, %v5946_v15  ;;  %v3828_v62 = vpop.permute.xlu1 %3827  ;;  %v3830_v0 = vpop.permute.xlu0 %3829 }
 0x684   : > { %v3832_v46 = vsel %vm3831_vm9, %v3828_v62, %v3830_v0  ;;  %vm7723_vm9 = vmmov %vm7714_vm1 }
 0x685   : > { %v4046_v35 = vcombine.low %v3990_v4, %v4022_v32  ;;  %v4047_v59 = vcombine.high %v3990_v4, %v4022_v32  ;;  %v4048_v33 = vcombine.low %v3997_v10, %v4029_v43  ;;  %v4049_v16 = vcombine.high %v3997_v10, %v4029_v43 }
 0x686   : > { %v4050_v25 = vcombine.low %v4006_v20, %v4038_v8  ;;  %v4051_v3 = vcombine.high %v4006_v20, %v4038_v8  ;;  %v4070_v41 = vcombine.low %v3821_v63, %v3832_v46  ;;  %v4071_v11 = vcombine.high %v3821_v63, %v3832_v46 }
 0x687   : > { %v4576_v6 = vadd.f32 %v7298_v52, %v4046_v35  ;;  %v4580_v44 = vadd.f32 %v7296_v29, %v4047_v59  ;;  %v4584_v17 = vadd.f32 %v7300_v47, %v4048_v33  ;;  %v4588_v48 = vadd.f32 %v7302_v60, %v4049_v16  ;;  %v3835_v58 = vpop.permute.xlu1 %3834  ;;  %v3838_v54 = vpop.permute.xlu0 %3837 }
 0x688   : > { %v4592_v39 = vadd.f32 %v7304_v36, %v4050_v25  ;;  %v4596_v13 = vadd.f32 %v7306_v34, %v4051_v3  ;;  %v4078_v61 = vrot.slane %v4070_v41, %v5933_v45  ;;  %v7364_v23 = vrot.slane %v4071_v11, %v5933_v45 }
 0x689   : > { %4608 = vst.msk [vmem:[%s7345_s9] sm:$0xff] %vm7712_vm13, %v4576_v6  ;;  %vm7724_vm13 = vmmov %vm7714_vm1 }
 0x68a   : > { %4612 = vst.msk [vmem:[%s7345_s9 + $0x20] sm:$0xff] %vm7713_vm14, %v4580_v44  ;;  %v4118_v24 = vcombine.low %v4062_v18, %v4078_v61  ;;  %v4119_v12 = vcombine.high %v4062_v18, %v4078_v61  ;;  %v4134_v28 = vcombine.low %v7367_v7, %v7364_v23  ;;  %vm7725_vm14 = vmmov %vm7714_vm1 }
 0x68b   : > { %4616 = vst.msk [vmem:[%s7345_s9 + $0x40] sm:$0xff] %vm7714_vm1, %v4584_v17  ;;  %v3841_v14 = vpop.permute.xlu1 %3840  ;;  %v3845_v49 = vpop.permute.xlu0 %3844 }
 0x68c   : > { %4620 = vst.msk [vmem:[%s7345_s9 + $0x60] sm:$0xff] %vm7715_vm2, %v4588_v48  ;;  %v4086_v57 = vcombine.low %v3835_v58, %v3841_v14  ;;  %v4087_v53 = vcombine.high %v3835_v58, %v3841_v14  ;;  %v4126_v4 = vrot.slane %v4118_v24, %v5946_v15  ;;  %v4133_v10 = vrot.slane %v4119_v12, %v5946_v15  ;;  %vm7726_vm2 = vmmov %vm7714_vm1 }
 0x68d   : > { %4624 = vst.msk [vmem:[%s7345_s9 + $0x80] sm:$0xff] %vm7716_vm12, %v4592_v39  ;;  %v4142_v20 = vrot.slane %v4134_v28, %v5946_v15  ;;  %vm7727_vm12 = vmmov %vm7714_vm1 }
 0x68e   : > { %4628 = vst.msk [vmem:[%s7345_s9 + $0xa0] sm:$0xff] %vm7717_vm15, %v4596_v13  ;;  %v4094_v1 = vrot.slane %v4086_v57, %v5933_v45  ;;  %v7371_v30 = vrot.slane %v4087_v53, %v5933_v45  ;;  %vm7728_vm15 = vmmov %vm7714_vm1 }
 0x68f   : > { %v3859_v42 = vpop.permute.xlu0 %3858  ;;  %v3847_v38 = vpop.permute.xlu1 %3846 }
 0x690   : > { %v3849_v56 = vsel %vm3848_vm10, %v3845_v49, %v3847_v38  ;;  %vm3912_vm10 = vcmask 31744  }
 0x691   : > { %v4102_v9 = vcombine.low %v3838_v54, %v3849_v56  ;;  %v4103_v26 = vcombine.high %v3838_v54, %v3849_v56 }
 0x693   : > { %v4110_v51 = vrot.slane %v4102_v9, %v5933_v45  ;;  %v7375_v50 = vrot.slane %v4103_v26, %v5933_v45  ;;  %v3852_v55 = vpop.permute.xlu0 %3851  ;;  %v3855_v63 = vpop.permute.xlu1 %3854 }
 0x695   : > { %v4150_v22 = vcombine.low %v4094_v1, %v4110_v51  ;;  %v4151_v21 = vcombine.high %v4094_v1, %v4110_v51  ;;  %v4166_v5 = vcombine.low %v7371_v30, %v7375_v50 }
 0x697   : > { %v4158_v32 = vrot.slane %v4150_v22, %v5946_v15  ;;  %v4165_v43 = vrot.slane %v4151_v21, %v5946_v15  ;;  %v4174_v8 = vrot.slane %v4166_v5, %v5946_v15  ;;  %v3876_v62 = vpop.permute.xlu0 %3875  ;;  %v3861_v0 = vpop.permute.xlu1 %3860 }
 0x698   : > { %v3863_v13 = vsel %vm3862_vm0, %v3859_v42, %v3861_v0  ;;  %vm7730_vm0 = vmmov %vm7714_vm1 }
 0x699   : > { %v4182_v35 = vcombine.low %v4126_v4, %v4158_v32  ;;  %v4183_v59 = vcombine.high %v4126_v4, %v4158_v32  ;;  %v4184_v33 = vcombine.low %v4133_v10, %v4165_v43  ;;  %v4185_v16 = vcombine.high %v4133_v10, %v4165_v43 }
 0x69a   : > { %v4186_v25 = vcombine.low %v4142_v20, %v4174_v8  ;;  %v4187_v3 = vcombine.high %v4142_v20, %v4174_v8  ;;  %v4190_v14 = vcombine.low %v3852_v55, %v3863_v13  ;;  %v4191_v61 = vcombine.high %v3852_v55, %v3863_v13 }
 0x69b   : > { %v4577_v46 = vadd.f32 %v7298_v52, %v4182_v35  ;;  %v4581_v6 = vadd.f32 %v7296_v29, %v4183_v59  ;;  %v4585_v44 = vadd.f32 %v7300_v47, %v4184_v33  ;;  %v4589_v17 = vadd.f32 %v7302_v60, %v4185_v16  ;;  %v3866_v48 = vpop.permute.xlu0 %3865  ;;  %v3869_v58 = vpop.permute.xlu1 %3868 }
 0x69c   : > { %v4593_v54 = vadd.f32 %v7304_v36, %v4186_v25  ;;  %v4597_v39 = vadd.f32 %v7306_v34, %v4187_v3  ;;  %v4206_v41 = vcombine.low %v3855_v63, %v3866_v48  ;;  %v4207_v49 = vcombine.high %v3855_v63, %v3866_v48 }
 0x69d   : > { %4609 = vst.msk [vmem:[%s7345_s9 + $0x8] sm:$0xff] %vm7718_vm3, %v4577_v46  ;;  %v4198_v38 = vrot.slane %v4190_v14, %v5933_v45  ;;  %v7411_v12 = vrot.slane %v4191_v61, %v5933_v45  ;;  %vm7731_vm3 = vmmov %vm7730_vm0 }
 0x69e   : > { %4613 = vst.msk [vmem:[%s7345_s9 + $0x28] sm:$0xff] %vm7719_vm4, %v4581_v6  ;;  %v4214_v57 = vrot.slane %v4206_v41, %v5933_v45  ;;  %v7408_v18 = vrot.slane %v4207_v49, %v5933_v45  ;;  %vm7732_vm4 = vmmov %vm7730_vm0 }
 0x69f   : > { %4617 = vst.msk [vmem:[%s7345_s9 + $0x48] sm:$0xff] %vm7720_vm5, %v4585_v44  ;;  %v3872_v31 = vpop.permute.xlu0 %3871  ;;  %v3878_v11 = vpop.permute.xlu1 %3877  ;;  %vm7733_vm5 = vmmov %vm7730_vm0 }
 0x6a0   : > { %4621 = vst.msk [vmem:[%s7345_s9 + $0x68] sm:$0xff] %vm7721_vm7, %v4589_v17  ;;  %v3880_v27 = vsel %vm3879_vm11, %v3876_v62, %v3878_v11  ;;  %v4254_v1 = vcombine.low %v4198_v38, %v4214_v57  ;;  %v4255_v51 = vcombine.high %v4198_v38, %v4214_v57  ;;  %v4270_v21 = vcombine.low %v7411_v12, %v7408_v18  ;;  %vm7734_vm7 = vmmov %vm7730_vm0 }
 0x6a1   : > { %4625 = vst.msk [vmem:[%s7345_s9 + $0x88] sm:$0xff] %vm7722_vm8, %v4593_v54  ;;  %v4222_v53 = vcombine.low %v3869_v58, %v3880_v27  ;;  %v4223_v42 = vcombine.high %v3869_v58, %v3880_v27  ;;  %v4031_v27 = vcombine.high %v7322_v40, %v7326_v2  ;;  %vm7735_vm11 = vmmov %vm7730_vm0 }
 0x6a2   : > { %4629 = vst.msk [vmem:[%s7345_s9 + $0xa8] sm:$0xff] %vm7723_vm9, %v4597_v39  ;;  %v4262_v8 = vrot.slane %v4254_v1, %v5946_v15  ;;  %v4269_v62 = vrot.slane %v4255_v51, %v5946_v15  ;;  %v4278_v59 = vrot.slane %v4270_v21, %v5946_v15  ;;  %v4167_v1 = vcombine.high %v7371_v30, %v7375_v50  ;;  %vm7736_vm8 = vmmov %vm7730_vm0 }
 0x6a3   : > { %v3893_v56 = vpop.permute.xlu0 %3892  ;;  %v3883_v9 = vpop.permute.xlu1 %3882  ;;  %v4230_v55 = vrot.slane %v4222_v53, %v5933_v45  ;;  %v7415_v63 = vrot.slane %v4223_v42, %v5933_v45  ;;  %v3999_v42 = vcombine.high %v7318_v19, %v7315_v37  ;;  %vm7737_vm9 = vmmov %vm7730_vm0 }
 0x6a4   : > { %v4238_v26 = vcombine.low %v3872_v31, %v3883_v9  ;;  %v4239_v24 = vcombine.high %v3872_v31, %v3883_v9 }
 0x6a5   : > { %v7463_v19 = vrot.slane %v3999_v42, %v5946_v15 }
 0x6a6   : > { %v4246_v28 = vrot.slane %v4238_v26, %v5933_v45  ;;  %v7419_v22 = vrot.slane %v4239_v24, %v5933_v45  ;;  %v7456_v24 = vrot.slane %v4031_v27, %v5946_v15 }
 0x6a7   : > { %v3886_v5 = vpop.permute.xlu0 %3885  ;;  %v3889_v4 = vpop.permute.xlu1 %3888 }
 0x6a8   : > { %v4286_v10 = vcombine.low %v4230_v55, %v4246_v28  ;;  %v4287_v32 = vcombine.high %v4230_v55, %v4246_v28  ;;  %v4302_v43 = vcombine.low %v7415_v63, %v7419_v22 }
 0x6aa   : > { %v4294_v0 = vrot.slane %v4286_v10, %v5946_v15  ;;  %v4301_v20 = vrot.slane %v4287_v32, %v5946_v15  ;;  %v4310_v35 = vrot.slane %v4302_v43, %v5946_v15 }
 0x6ab   : > { %v3909_v33 = vpop.permute.xlu0 %3908  ;;  %v3895_v16 = vpop.permute.xlu1 %3894 }
 0x6ac   : > { %v4318_v25 = vcombine.low %v4262_v8, %v4294_v0  ;;  %v4319_v3 = vcombine.high %v4262_v8, %v4294_v0  ;;  %v4320_v46 = vcombine.low %v4269_v62, %v4301_v20  ;;  %v4321_v6 = vcombine.high %v4269_v62, %v4301_v20 }
 0x6ad   : > { %v4322_v44 = vcombine.low %v4278_v59, %v4310_v35  ;;  %v4323_v17 = vcombine.high %v4278_v59, %v4310_v35  ;;  %v3896_v31 = vsel %vm2586_vm6, %v3893_v56, %v3895_v16  ;;  %v4303_v62 = vcombine.high %v7415_v63, %v7419_v22  ;;  %vm7729_vm6 = vmmov %vm7714_vm1 }
 0x6ae   : > { %v4578_v48 = vadd.f32 %v7298_v52, %v4318_v25  ;;  %v4582_v58 = vadd.f32 %v7296_v29, %v4319_v3  ;;  %v4586_v54 = vadd.f32 %v7300_v47, %v4320_v46  ;;  %v4590_v39 = vadd.f32 %v7302_v60, %v4321_v6 }
 0x6af   : > { %v4594_v13 = vadd.f32 %v7304_v36, %v4322_v44  ;;  %v4598_v41 = vadd.f32 %v7306_v34, %v4323_v17  ;;  %v3899_v14 = vpop.permute.xlu0 %3898  ;;  %v3902_v49 = vpop.permute.xlu1 %3901  ;;  %v4326_v61 = vcombine.low %v3886_v5, %v3896_v31  ;;  %v4327_v38 = vcombine.high %v3886_v5, %v3896_v31 }
 0x6b0   : > { %4610 = vst.msk [vmem:[%s7345_s9 + $0x10] sm:$0xff] %vm7724_vm13, %v4578_v48  ;;  %v4342_v11 = vcombine.low %v3889_v4, %v3899_v14  ;;  %v4343_v57 = vcombine.high %v3889_v4, %v3899_v14  ;;  %v4135_v5 = vcombine.high %v7367_v7, %v7364_v23  ;;  %v4053_v20 = vcombine.high %v7463_v19, %v7456_v24  ;;  %vm7738_vm13 = vmmov %vm7730_vm0 }
 0x6b1   : > { %4614 = vst.msk [vmem:[%s7345_s9 + $0x30] sm:$0xff] %vm7725_vm14, %v4582_v58  ;;  %v4334_v40 = vrot.slane %v4326_v61, %v5933_v45  ;;  %v4341_v4 = vrot.slane %v4327_v38, %v5933_v45  ;;  %v4181_v23 = vrot.slane %v4167_v1, %v5946_v15  ;;  %v4271_v16 = vcombine.high %v7411_v12, %v7408_v18  ;;  %vm7739_vm14 = vmmov %vm7730_vm0 }
 0x6b2   : > { %4618 = vst.msk [vmem:[%s7345_s9 + $0x50] sm:$0xff] %vm7714_vm1, %v4586_v54  ;;  %v4350_v9 = vrot.slane %v4342_v11, %v5933_v45  ;;  %v4357_v2 = vrot.slane %v4343_v57, %v5933_v45  ;;  %v4317_v48 = vrot.slane %v4303_v62, %v5946_v15  ;;  %vm7740_vm1 = vmmov %vm7730_vm0 }
 0x6b3   : > { %4622 = vst.msk [vmem:[%s7345_s9 + $0x70] sm:$0xff] %vm7726_vm2, %v4590_v39  ;;  %v3911_v53 = vpop.permute.xlu1 %3910  ;;  %v3905_v51 = vpop.permute.xlu0 %3904  ;;  %v4285_v14 = vrot.slane %v4271_v16, %v5946_v15  ;;  %vm7741_vm2 = vmmov %vm7730_vm0 }
 0x6b4   : > { %4626 = vst.msk [vmem:[%s7345_s9 + $0x90] sm:$0xff] %vm7727_vm12, %v4594_v13  ;;  %v3913_v26 = vsel %vm3912_vm10, %v3909_v33, %v3911_v53  ;;  %v4390_v10 = vcombine.low %v4334_v40, %v4350_v9  ;;  %v4391_v32 = vcombine.high %v4334_v40, %v4350_v9  ;;  %v4406_v0 = vcombine.low %v4341_v4, %v4357_v2  ;;  %vm7742_vm12 = vmmov %vm7730_vm0 }
 0x6b5   : > { %4630 = vst.msk [vmem:[%s7345_s9 + $0xb0] sm:$0xff] %vm7728_vm15, %v4598_v41  ;;  %v4358_v56 = vcombine.low %v3902_v49, %v3913_v26  ;;  %v4359_v55 = vcombine.high %v3902_v49, %v3913_v26  ;;  %v4407_v3 = vcombine.high %v4341_v4, %v4357_v2  ;;  %v4325_v42 = vcombine.high %v4285_v14, %v4317_v48 }
 0x6b6   : > { %v4398_v25 = vrot.slane %v4390_v10, %v5946_v15  ;;  %v4405_v63 = vrot.slane %v4391_v32, %v5946_v15  ;;  %v4414_v44 = vrot.slane %v4406_v0, %v5946_v15  ;;  %v4324_v9 = vcombine.low %v4285_v14, %v4317_v48 }
 0x6b7   : > { %v3916_v28 = vpop.permute.xlu1 %3915  ;;  %v4366_v30 = vrot.slane %v4358_v56, %v5933_v45  ;;  %v4373_v50 = vrot.slane %v4359_v55, %v5933_v45  ;;  %v4421_v49 = vrot.slane %v4407_v3, %v5946_v15 }
 0x6b8   : > { %v4374_v21 = vcombine.low %v3905_v51, %v3916_v28  ;;  %v4375_v37 = vcombine.high %v3905_v51, %v3916_v28 }
 0x6ba   : > { %v4382_v43 = vrot.slane %v4374_v21, %v5933_v45  ;;  %v4389_v8 = vrot.slane %v4375_v37, %v5933_v45  ;;  %v4149_v45 = vrot.slane %v4135_v5, %v5946_v15 }
 0x6bc   : > { %v4422_v7 = vcombine.low %v4366_v30, %v4382_v43  ;;  %v4423_v35 = vcombine.high %v4366_v30, %v4382_v43  ;;  %v4438_v59 = vcombine.low %v4373_v50, %v4389_v8  ;;  %v4439_v33 = vcombine.high %v4373_v50, %v4389_v8 }
 0x6bd   : > { %v4189_v17 = vcombine.high %v4149_v45, %v4181_v23 }
 0x6be   : > { %v4430_v22 = vrot.slane %v4422_v7, %v5946_v15  ;;  %v4437_v46 = vrot.slane %v4423_v35, %v5946_v15  ;;  %v4446_v6 = vrot.slane %v4438_v59, %v5946_v15  ;;  %v4453_v18 = vrot.slane %v4439_v33, %v5946_v15 }
 0x6c0   : > { %v4454_v12 = vcombine.low %v4398_v25, %v4430_v22  ;;  %v4455_v58 = vcombine.high %v4398_v25, %v4430_v22  ;;  %v4456_v54 = vcombine.low %v4405_v63, %v4437_v46  ;;  %v4457_v39 = vcombine.high %v4405_v63, %v4437_v46 }
 0x6c1   : > { %v4458_v13 = vcombine.low %v4414_v44, %v4446_v6  ;;  %v4459_v41 = vcombine.high %v4414_v44, %v4446_v6  ;;  %v4461_v38 = vcombine.high %v4421_v49, %v4453_v18  ;;  %v4460_v26 = vcombine.low %v4421_v49, %v4453_v18 }
 0x6c2   : > { %v4579_v31 = vadd.f32 %v7298_v52, %v4454_v12  ;;  %v4583_v11 = vadd.f32 %v7296_v29, %v4455_v58  ;;  %v4587_v27 = vadd.f32 %v7300_v47, %v4456_v54  ;;  %v4591_v61 = vadd.f32 %v7302_v60, %v4457_v39 }
 0x6c3   : > { %v4595_v57 = vadd.f32 %v7304_v36, %v4458_v13  ;;  %v4599_v53 = vadd.f32 %v7306_v34, %v4459_v41  ;;  %v4052_v36 = vcombine.low %v7463_v19, %v7456_v24  ;;  %v4188_v34 = vcombine.low %v4149_v45, %v4181_v23 }
 0x6c4   : > { %4611 = vst.msk [vmem:[%s7345_s9 + $0x18] sm:$0xff] %vm7729_vm6, %v4579_v31  ;;  %v4574_v15 = vpop.permute.xlu0 %4573 }
 0x6c5   : > { %4615 = vst.msk [vmem:[%s7345_s9 + $0x38] sm:$0xff] %vm7730_vm0, %v4583_v11  ;;  %v4604_v29 = vadd.f32 %v4574_v15, %v4053_v20  ;;  %v4605_v52 = vadd.f32 %v4574_v15, %v4189_v17  ;;  %v4606_v47 = vadd.f32 %v4574_v15, %v4325_v42  ;;  %v4607_v60 = vadd.f32 %v4574_v15, %v4461_v38 }
 0x6c6   : > { %4619 = vst.msk [vmem:[%s7345_s9 + $0x58] sm:$0xff] %vm7731_vm3, %v4587_v27 }
 0x6c7   : > { %4623 = vst.msk [vmem:[%s7345_s9 + $0x78] sm:$0xff] %vm7732_vm4, %v4591_v61 }
 0x6c8   : > { %4627 = vst.msk [vmem:[%s7345_s9 + $0x98] sm:$0xff] %vm7733_vm5, %v4595_v57  ;;  %v4570_v56 = vpop.permute.xlu1 %4569 }
 0x6c9   : > { %4631 = vst.msk [vmem:[%s7345_s9 + $0xb8] sm:$0xff] %vm7734_vm7, %v4599_v53  ;;  %v4600_v1 = vadd.f32 %v4570_v56, %v4052_v36  ;;  %v4601_v40 = vadd.f32 %v4570_v56, %v4188_v34  ;;  %v4602_v2 = vadd.f32 %v4570_v56, %v4324_v9  ;;  %v4603_v51 = vadd.f32 %v4570_v56, %v4460_v26 }
 0x6ca   : > { %4636 = vst.msk [vmem:[%s7345_s9 + $0xe0] sm:$0xff] %vm7735_vm11, %v4604_v29 }
 0x6cb   : > { %4637 = vst.msk [vmem:[%s7345_s9 + $0xe8] sm:$0xff] %vm7736_vm8, %v4605_v52 }
 0x6cc   : > { %4638 = vst.msk [vmem:[%s7345_s9 + $0xf0] sm:$0xff] %vm7737_vm9, %v4606_v47 }
 0x6cd   : > { %4639 = vst.msk [vmem:[%s7345_s9 + $0xf8] sm:$0xff] %vm7738_vm13, %v4607_v60 }
 0x6ce   : > { %4632 = vst.msk [vmem:[%s7345_s9 + $0xc0] sm:$0xff] %vm7739_vm14, %v4600_v1 }
 0x6cf   : > { %4633 = vst.msk [vmem:[%s7345_s9 + $0xc8] sm:$0xff] %vm7740_vm1, %v4601_v40 }
 0x6d0   : > { %4634 = vst.msk [vmem:[%s7345_s9 + $0xd0] sm:$0xff] %vm7741_vm2, %v4602_v2 }
 0x6d1   : > { %4635 = vst.msk [vmem:[%s7345_s9 + $0xd8] sm:$0xff] %vm7742_vm12, %v4603_v51 }
 0x6d2   : > { %5394 = shalt.err (!%p5391_p1)
}
 0x6d3   : > { %s5395_s30 = scalar_lea.hbm %s7523_s13, 4096  ;;  %s5399_s17 = scalar_lea.hbm %s7583_s5, 8192 }
 0x6d4   : > { %p5396_p13 = scmp.ne.s32.totalorder %s7523_s13, %s5395_s30  ;;  %p5400_p4 = scmp.lt.u32.totalorder %s7523_s13, %s7583_s5 }
 0x6d5   : > { %p5401_p5 = scmp.lt.u32.totalorder %s5399_s17, %s5395_s30  ;;  %p5403_p8 = scmp.lt.u32.totalorder %s5395_s30, %s7523_s13 }
 0x6d6   : > { %p5397_p6 = pnand %p5396_p13, %p7743_p0 }
 0x6d7   : > { %p5402_p11 = por %p5401_p5, %p5400_p4 }
 0x6d8   : > { %p5398_p10 = pneg %p5397_p6 }
 0x6d9   : > { %p5404_p2 = por %p5403_p8, %p5402_p11 }
 0x6db   : > { %p5405_p3 = pnand %p5404_p2, %p5398_p10 }
 0x6dd   : > { %5408 = shalt.err (!%p5405_p3)
}
 0x6de   : > { %s5531_s22 = smov 128  }
 0x6df   : > { %5070 = dma.vmem_to_hbm [thread:$0]  (%p7743_p0), %s7525_s16, 4096, %s7523_s13, %s4641_s24, %s5531_s22, %s5531_s22, %s5462_s28  }
 0x6e0 PF: > { %s4669_s10 = sand.u32 1, %s5439_s18   ;;  %p7744_p7 = scmp.ne.s32.totalorder %s7620_s25, 0 }
 0x6e1   : > { %p7745_p9 = scmp.ge.s32.totalorder %s5451_s21, 2  ;;  %s4670_s26 = scalar_lea.sflag [#allocation5], %s4669_s10 }
 0x6e3   : > { %p5084_p12 = pnand %p7745_p9, %p7744_p7 }
 0x6e5   : > { %5434 = dma.done.wait (!%p5084_p12), %s4670_s26, 4096  }
 0x6e6   : > { %5436 = vsyncadd (!%p5084_p12), %s4670_s26, 4294963200  ;;  %p19_p1 = scmp.ge.s32.totalorder %s5678_s29, 4   ;;  %s7746_s18 = smov %s5443_s19 }
 0x6e7   : > { %s7747_s19 = smov %s5447_s20  ;;  %s7748_s20 = smov %s5694_s27 }
 0x6e8   : > { %s7749_s21 = smov %s5678_s29  ;;  %21 = sbr.rel (!%p19_p1) target bundleno = 6 (0x6), region = 95 }
 0x6ef   :  { %4675 = vsyncpa [#allocation4], 1 }
 0x6f0   :  { %4677 = vsyncpa [#allocation4 + $0x1], 1 }
 0x6f1   :  { %4678 = vsyncpa [#allocation7], 1 }
 0x6f2   :  { %4679 = vsyncpa [#allocation5], 1 }
 0x6f3   :  { %4681 = vsyncpa [#allocation5 + $0x1], 1 }

</bundles_post_ra>
